<compile_context>
chip_gen: v7x
topology: tpu7x:2x2x1
jax: 0.10.0
libtpu: 0.0.40
codegen_flags: <defaults>
</compile_context>

<pallas_src>
import jax
import jax.numpy as jnp
from jax import lax
from jax.experimental import pallas as pl
from jax.experimental.pallas import tpu as pltpu


def _round_up(x, m):
    return ((x + m - 1) // m) * m


# ----------------------------- Pallas kernels ------------------------------

def _conv_pool_relu_kernel(p_ref, w_ref, b_ref, o_ref):
    # p_ref: (4, TILE_N, K*K*Cin) -- 4 = the 2x2 pool offsets; row n of every
    #        group corresponds to the same pooled output position.
    # w_ref: (K*K*Cin, Cout), b_ref: (1, Cout) f32, o_ref: (TILE_N, Cout) f32
    w = w_ref[...]
    y0 = jnp.dot(p_ref[0], w, preferred_element_type=jnp.float32)
    y1 = jnp.dot(p_ref[1], w, preferred_element_type=jnp.float32)
    y2 = jnp.dot(p_ref[2], w, preferred_element_type=jnp.float32)
    y3 = jnp.dot(p_ref[3], w, preferred_element_type=jnp.float32)
    pooled = jnp.maximum(jnp.maximum(y0, y1), jnp.maximum(y2, y3))
    # Bias after the pool (mathematically identical, 4x fewer VALU adds).
    o_ref[...] = jnp.maximum(pooled + b_ref[...], 0.0).astype(o_ref.dtype)


def _mlp_kernel(x_ref, w1_ref, b1_ref, w2_ref, b2_ref, o_ref):
    # x_ref: (TILE_B, 320), w1_ref: (320, 50), w2_ref: (50, 10)
    h = jnp.dot(x_ref[...], w1_ref[...], preferred_element_type=jnp.float32)
    h = jnp.maximum(h + b1_ref[...], 0.0)
    # TODO(synk): Dropout2d / F.dropout are identity in eval mode; training
    # random masks are not implemented here.
    o = jnp.dot(h.astype(w2_ref.dtype), w2_ref[...],
                preferred_element_type=jnp.float32)
    o_ref[...] = (o + b2_ref[...]).astype(o_ref.dtype)


# ------------------------------- JAX glue ----------------------------------

def _im2col_pooled(x_nhwc, k):
    """KxK valid-conv patches grouped by 2x2 pool offset: (4, B*HP*WP, K*K*Cin)."""
    b, h, w, cin = x_nhwc.shape
    ho, wo = h - k + 1, w - k + 1
    hp, wp = ho // 2, wo // 2
    cols = [x_nhwc[:, kh:kh + ho, kw:kw + wo, :]
            for kh in range(k) for kw in range(k)]
    patches = jnp.stack(cols, axis=3).reshape(b, ho, wo, k * k * cin)
    groups = [patches[:, ph::2, pw::2, :] for ph in (0, 1) for pw in (0, 1)]
    p = jnp.stack(groups, axis=0).reshape(4, b * hp * wp, k * k * cin)
    return p, (b, hp, wp)


def conv_pool_relu(x_nhwc, wmat, bias, k, *, tile_n):
    kkc, cout = wmat.shape
    p, (b, hp, wp) = _im2col_pooled(x_nhwc, k)
    n = b * hp * wp
    tile_n = min(tile_n, _round_up(n, 8))          # VMEM-bounded tile, mult. of 8
    n_pad = _round_up(n, tile_n)
    if n_pad != n:
        p = jnp.pad(p, ((0, 0), (0, n_pad - n), (0, 0)))
    p = p.astype(wmat.dtype)                       # bf16 stream when weights are bf16
    out = pl.pallas_call(
        _conv_pool_relu_kernel,
        out_shape=jax.ShapeDtypeStruct((n_pad, cout), jnp.float32),
        grid=(n_pad // tile_n,),
        in_specs=[pl.BlockSpec((4, tile_n, kkc), lambda i: (0, i, 0)),
                  pl.BlockSpec((kkc, cout), lambda i: (0, 0)),   # resident weights
                  pl.BlockSpec((1, cout), lambda i: (0, 0))],
        out_specs=pl.BlockSpec((tile_n, cout), lambda i: (i, 0)),
        compiler_params=pltpu.CompilerParams(
            dimension_semantics=("parallel",)),
    )(p, wmat, bias)
    return out[:n].reshape(b, hp, wp, cout)


def mlp(x, w1, b1, w2, b2, *, tile_b=512):
    bsz, din = x.shape
    dh, dout = w1.shape[1], w2.shape[1]
    tile_b = min(tile_b, _round_up(bsz, 8))
    b_pad = _round_up(bsz, tile_b)
    if b_pad != bsz:
        x = jnp.pad(x, ((0, b_pad - bsz), (0, 0)))
    x = x.astype(w1.dtype)
    out = pl.pallas_call(
        _mlp_kernel,
        out_shape=jax.ShapeDtypeStruct((b_pad, dout), jnp.float32),
        grid=(b_pad // tile_b,),
        in_specs=[pl.BlockSpec((tile_b, din), lambda i: (i, 0)),
                  pl.BlockSpec((din, dh), lambda i: (0, 0)),
                  pl.BlockSpec((1, dh), lambda i: (0, 0)),
                  pl.BlockSpec((dh, dout), lambda i: (0, 0)),
                  pl.BlockSpec((1, dout), lambda i: (0, 0))],
        out_specs=pl.BlockSpec((tile_b, dout), lambda i: (i, 0)),
        compiler_params=pltpu.CompilerParams(
            dimension_semantics=("parallel",)),
    )(x, w1, b1, w2, b2)
    return out[:bsz]


# ------------------------ parameter preparation -----------------------------

def prepare_params(params, conv_dtype=jnp.bfloat16):
    """One-time repack of torch-layout params into kernel-friendly layouts.

    * conv weights (Cout,Cin,KH,KW) -> (KH*KW*Cin, Cout) matmul matrices,
      cast to `conv_dtype` (the patch streams follow; f32 accumulation).
    * fc1 weight columns permuted from torch's NCHW flatten order to NHWC so
      the conv2 output is flattened without an activation transpose.
    """
    def conv_mat(w):
        cout, cin, kh, kw = w.shape
        return (jnp.transpose(w, (2, 3, 1, 0))
                .reshape(kh * kw * cin, cout).astype(conv_dtype))

    fc1_w = params["fc1_w"]                                      # (50, 320), 320 = (C=20,H=4,W=4)
    fc1_w_nhwc = (fc1_w.reshape(50, 20, 4, 4)
                  .transpose(0, 2, 3, 1).reshape(50, 320).T)     # (320, 50), NHWC column order
    return {
        "conv1_w": conv_mat(params["conv1_w"]),
        "conv1_b": params["conv1_b"].reshape(1, -1).astype(jnp.float32),
        "conv2_w": conv_mat(params["conv2_w"]),
        "conv2_b": params["conv2_b"].reshape(1, -1).astype(jnp.float32),
        "fc1_w": fc1_w_nhwc.astype(jnp.float32),
        "fc1_b": params["fc1_b"].reshape(1, -1).astype(jnp.float32),
        "fc2_w": params["fc2_w"].T.astype(jnp.float32),          # (50, 10)
        "fc2_b": params["fc2_b"].reshape(1, -1).astype(jnp.float32),
    }


def cnn_mnist_forward(x_nchw, packed):
    x = jnp.transpose(x_nchw, (0, 2, 3, 1))                              # NCHW -> NHWC
    x = conv_pool_relu(x, packed["conv1_w"], packed["conv1_b"], 5,
                       tile_n=4096)                                      # (B,12,12,10)
    x = conv_pool_relu(x, packed["conv2_w"], packed["conv2_b"], 5,
                       tile_n=1024)                                      # (B, 4, 4,20)
    x = x.reshape(x.shape[0], -1)            # NHWC flatten; fc1_w already permuted to match
    return mlp(x, packed["fc1_w"], packed["fc1_b"],
               packed["fc2_w"], packed["fc2_b"])


# ------------------------ deterministic parameters ---------------------------

def init_params(key):
    ks = jax.random.split(key, 8)
    s = 0.1
    return {
        "conv1_w": s * jax.random.normal(ks[0], (10, 1, 5, 5), jnp.float32),
        "conv1_b": s * jax.random.normal(ks[1], (10,), jnp.float32),
        "conv2_w": s * jax.random.normal(ks[2], (20, 10, 5, 5), jnp.float32),
        "conv2_b": s * jax.random.normal(ks[3], (20,), jnp.float32),
        "fc1_w":   s * jax.random.normal(ks[4], (50, 320), jnp.float32),
        "fc1_b":   s * jax.random.normal(ks[5], (50,), jnp.float32),
        "fc2_w":   s * jax.random.normal(ks[6], (10, 50), jnp.float32),
        "fc2_b":   s * jax.random.normal(ks[7], (10,), jnp.float32),
    }


# ------------------------------ JAX reference --------------------------------

def reference_forward(x_nchw, params):
    def conv(x, w, b):
        y = lax.conv_general_dilated(x, w, (1, 1), "VALID",
                                     dimension_numbers=("NCHW", "OIHW", "NCHW"))
        return y + b.reshape(1, -1, 1, 1)

    def pool(x):
        n, c, h, w = x.shape
        return x.reshape(n, c, h // 2, 2, w // 2, 2).max(axis=(3, 5))

    y = jnp.maximum(pool(conv(x_nchw, params["conv1_w"], params["conv1_b"])), 0.0)
    y = jnp.maximum(pool(conv(y, params["conv2_w"], params["conv2_b"])), 0.0)
    y = y.reshape(y.shape[0], -1)
    y = jnp.maximum(y @ params["fc1_w"].T + params["fc1_b"], 0.0)
    return y @ params["fc2_w"].T + params["fc2_b"]


if __name__ == "__main__":
    key = jax.random.PRNGKey(0)
    kx, kp = jax.random.split(key)
    # MNIST-shaped input: fc1 expects 320 = 20*4*4, which forces 28x28 spatial.
    x = jax.random.normal(kx, (2, 1, 28, 28), jnp.float32)
    params = init_params(kp)
    ref = jax.block_until_ready(reference_forward(x, params))

    fwd = jax.jit(cnn_mnist_forward)

    # Strict check: f32 streams everywhere.
    out_f32 = jax.block_until_ready(fwd(x, prepare_params(params, jnp.float32)))
    assert out_f32.shape == (2, 10), out_f32.shape
    err = float(jnp.max(jnp.abs(out_f32 - ref)))
    assert err < 1e-3, f"f32 max abs error vs reference: {err}"

    # bf16 conv streams (halves HBM traffic of the dominant patch matrices),
    # f32 accumulation on the MXU -- looser tolerance for bf16 rounding.
    out_bf16 = jax.block_until_ready(fwd(x, prepare_params(params, jnp.bfloat16)))
    err16 = float(jnp.max(jnp.abs(out_bf16 - ref)))
    assert err16 < 5e-2, f"bf16 max abs error vs reference: {err16}"

    print("KERNEL_OK")
</pallas_src>

<mosaic_0001>
module attributes {stable_mosaic.version = 11 : i64} {
  func.func @_conv_pool_relu_kernel(%arg0: i32, %arg1: memref<4x288x25xf32, #tpu.memory_space<vmem>>, %arg2: memref<25x10xf32, #tpu.memory_space<vmem>>, %arg3: memref<1x10xf32, #tpu.memory_space<vmem>>, %arg4: memref<288x10xf32, #tpu.memory_space<vmem>>) attributes {dimension_semantics = [#tpu.dimension_semantics<parallel>], iteration_bounds = array<i64: 1>, scalar_prefetch = 0 : i64, scratch_operands = 0 : i64, tpu.core_type = #tpu.core_type<tc>, window_params = [{transform_indices = @transform_0, window_bounds = array<i64: 4, 288, 25>}, {pipeline_mode = #tpu.pipeline_mode<synchronous>, transform_indices = @transform_1, window_bounds = array<i64: 25, 10>}, {pipeline_mode = #tpu.pipeline_mode<synchronous>, transform_indices = @transform_2, window_bounds = array<i64: 1, 10>}, {transform_indices = @transform_3, window_bounds = array<i64: 288, 10>}]} {
    %c0 = arith.constant 0 : index
    %c0_0 = arith.constant 0 : index
    %0 = vector.load %arg2[%c0, %c0_0] : memref<25x10xf32, #tpu.memory_space<vmem>>, vector<25x10xf32>
    %c0_1 = arith.constant 0 : index
    %c0_2 = arith.constant 0 : index
    %c0_3 = arith.constant 0 : index
    %1 = vector.load %arg1[%c0_1, %c0_2, %c0_3] : memref<4x288x25xf32, #tpu.memory_space<vmem>>, vector<1x288x25xf32>
    %2 = vector.shape_cast %1 : vector<1x288x25xf32> to vector<288x25xf32>
    %cst = arith.constant dense<0.000000e+00> : vector<288x10xf32>
    %3 = tpu.matmul %2, %0, %cst {dimension_numbers = #tpu.dot_dimension_numbers<[1], [0], [0], [1], [0, 0, 1, 1], [], []>} : vector<288x25xf32>, vector<25x10xf32>, vector<288x10xf32> -> vector<288x10xf32>
    %c1 = arith.constant 1 : index
    %c0_4 = arith.constant 0 : index
    %c0_5 = arith.constant 0 : index
    %4 = vector.load %arg1[%c1, %c0_4, %c0_5] : memref<4x288x25xf32, #tpu.memory_space<vmem>>, vector<1x288x25xf32>
    %5 = vector.shape_cast %4 : vector<1x288x25xf32> to vector<288x25xf32>
    %cst_6 = arith.constant dense<0.000000e+00> : vector<288x10xf32>
    %6 = tpu.matmul %5, %0, %cst_6 {dimension_numbers = #tpu.dot_dimension_numbers<[1], [0], [0], [1], [0, 0, 1, 1], [], []>} : vector<288x25xf32>, vector<25x10xf32>, vector<288x10xf32> -> vector<288x10xf32>
    %c2 = arith.constant 2 : index
    %c0_7 = arith.constant 0 : index
    %c0_8 = arith.constant 0 : index
    %7 = vector.load %arg1[%c2, %c0_7, %c0_8] : memref<4x288x25xf32, #tpu.memory_space<vmem>>, vector<1x288x25xf32>
    %8 = vector.shape_cast %7 : vector<1x288x25xf32> to vector<288x25xf32>
    %cst_9 = arith.constant dense<0.000000e+00> : vector<288x10xf32>
    %9 = tpu.matmul %8, %0, %cst_9 {dimension_numbers = #tpu.dot_dimension_numbers<[1], [0], [0], [1], [0, 0, 1, 1], [], []>} : vector<288x25xf32>, vector<25x10xf32>, vector<288x10xf32> -> vector<288x10xf32>
    %c3 = arith.constant 3 : index
    %c0_10 = arith.constant 0 : index
    %c0_11 = arith.constant 0 : index
    %10 = vector.load %arg1[%c3, %c0_10, %c0_11] : memref<4x288x25xf32, #tpu.memory_space<vmem>>, vector<1x288x25xf32>
    %11 = vector.shape_cast %10 : vector<1x288x25xf32> to vector<288x25xf32>
    %cst_12 = arith.constant dense<0.000000e+00> : vector<288x10xf32>
    %12 = tpu.matmul %11, %0, %cst_12 {dimension_numbers = #tpu.dot_dimension_numbers<[1], [0], [0], [1], [0, 0, 1, 1], [], []>} : vector<288x25xf32>, vector<25x10xf32>, vector<288x10xf32> -> vector<288x10xf32>
    %13 = arith.maximumf %3, %6 : vector<288x10xf32>
    %14 = arith.maximumf %9, %12 : vector<288x10xf32>
    %15 = arith.maximumf %13, %14 : vector<288x10xf32>
    %c0_13 = arith.constant 0 : index
    %c0_14 = arith.constant 0 : index
    %16 = vector.load %arg3[%c0_13, %c0_14] : memref<1x10xf32, #tpu.memory_space<vmem>>, vector<1x10xf32>
    %17 = vector.broadcast %16 : vector<1x10xf32> to vector<288x10xf32>
    %18 = arith.addf %15, %17 : vector<288x10xf32>
    %cst_15 = arith.constant 0.000000e+00 : f32
    %19 = vector.broadcast %cst_15 : f32 to vector<288x10xf32>
    %20 = arith.maximumf %18, %19 : vector<288x10xf32>
    %c0_16 = arith.constant 0 : index
    %c0_17 = arith.constant 0 : index
    %21 = vector.load %arg4[%c0_16, %c0_17] : memref<288x10xf32, #tpu.memory_space<vmem>>, vector<288x10xf32>
    tpu.vector_store %arg4[%c0_16, %c0_17], %20 {strides = array<i32>} : memref<288x10xf32, #tpu.memory_space<vmem>>, vector<288x10xf32>,
    return
  }
  func.func @transform_0(%arg0: i32) -> (i32, i32, i32) {
    %c0_i32 = arith.constant 0 : i32
    %c0_i32_0 = arith.constant 0 : i32
    %c0_i32_1 = arith.constant 0 : i32
    return %c0_i32, %arg0, %c0_i32_0 : i32, i32, i32
  }
  func.func @transform_1(%arg0: i32) -> (i32, i32) {
    %c0_i32 = arith.constant 0 : i32
    %c0_i32_0 = arith.constant 0 : i32
    %c0_i32_1 = arith.constant 0 : i32
    return %c0_i32, %c0_i32_0 : i32, i32
  }
  func.func @transform_2(%arg0: i32) -> (i32, i32) {
    %c0_i32 = arith.constant 0 : i32
    %c0_i32_0 = arith.constant 0 : i32
    %c0_i32_1 = arith.constant 0 : i32
    return %c0_i32, %c0_i32_0 : i32, i32
  }
  func.func @transform_3(%arg0: i32) -> (i32, i32) {
    %c0_i32 = arith.constant 0 : i32
    %c0_i32_0 = arith.constant 0 : i32
    return %arg0, %c0_i32 : i32, i32
  }
}

module attributes {stable_mosaic.version = 11 : i64} {
  func.func @_conv_pool_relu_kernel(%arg0: i32, %arg1: memref<4x32x250xf32, #tpu.memory_space<vmem>>, %arg2: memref<250x20xf32, #tpu.memory_space<vmem>>, %arg3: memref<1x20xf32, #tpu.memory_space<vmem>>, %arg4: memref<32x20xf32, #tpu.memory_space<vmem>>) attributes {dimension_semantics = [#tpu.dimension_semantics<parallel>], iteration_bounds = array<i64: 1>, scalar_prefetch = 0 : i64, scratch_operands = 0 : i64, tpu.core_type = #tpu.core_type<tc>, window_params = [{transform_indices = @transform_0, window_bounds = array<i64: 4, 32, 250>}, {pipeline_mode = #tpu.pipeline_mode<synchronous>, transform_indices = @transform_1, window_bounds = array<i64: 250, 20>}, {pipeline_mode = #tpu.pipeline_mode<synchronous>, transform_indices = @transform_2, window_bounds = array<i64: 1, 20>}, {transform_indices = @transform_3, window_bounds = array<i64: 32, 20>}]} {
    %c0 = arith.constant 0 : index
    %c0_0 = arith.constant 0 : index
    %0 = vector.load %arg2[%c0, %c0_0] : memref<250x20xf32, #tpu.memory_space<vmem>>, vector<250x20xf32>
    %c0_1 = arith.constant 0 : index
    %c0_2 = arith.constant 0 : index
    %c0_3 = arith.constant 0 : index
    %1 = vector.load %arg1[%c0_1, %c0_2, %c0_3] : memref<4x32x250xf32, #tpu.memory_space<vmem>>, vector<1x32x250xf32>
    %2 = vector.shape_cast %1 : vector<1x32x250xf32> to vector<32x250xf32>
    %cst = arith.constant dense<0.000000e+00> : vector<32x20xf32>
    %3 = tpu.matmul %2, %0, %cst {dimension_numbers = #tpu.dot_dimension_numbers<[1], [0], [0], [1], [0, 0, 1, 1], [], []>} : vector<32x250xf32>, vector<250x20xf32>, vector<32x20xf32> -> vector<32x20xf32>
    %c1 = arith.constant 1 : index
    %c0_4 = arith.constant 0 : index
    %c0_5 = arith.constant 0 : index
    %4 = vector.load %arg1[%c1, %c0_4, %c0_5] : memref<4x32x250xf32, #tpu.memory_space<vmem>>, vector<1x32x250xf32>
    %5 = vector.shape_cast %4 : vector<1x32x250xf32> to vector<32x250xf32>
    %cst_6 = arith.constant dense<0.000000e+00> : vector<32x20xf32>
    %6 = tpu.matmul %5, %0, %cst_6 {dimension_numbers = #tpu.dot_dimension_numbers<[1], [0], [0], [1], [0, 0, 1, 1], [], []>} : vector<32x250xf32>, vector<250x20xf32>, vector<32x20xf32> -> vector<32x20xf32>
    %c2 = arith.constant 2 : index
    %c0_7 = arith.constant 0 : index
    %c0_8 = arith.constant 0 : index
    %7 = vector.load %arg1[%c2, %c0_7, %c0_8] : memref<4x32x250xf32, #tpu.memory_space<vmem>>, vector<1x32x250xf32>
    %8 = vector.shape_cast %7 : vector<1x32x250xf32> to vector<32x250xf32>
    %cst_9 = arith.constant dense<0.000000e+00> : vector<32x20xf32>
    %9 = tpu.matmul %8, %0, %cst_9 {dimension_numbers = #tpu.dot_dimension_numbers<[1], [0], [0], [1], [0, 0, 1, 1], [], []>} : vector<32x250xf32>, vector<250x20xf32>, vector<32x20xf32> -> vector<32x20xf32>
    %c3 = arith.constant 3 : index
    %c0_10 = arith.constant 0 : index
    %c0_11 = arith.constant 0 : index
    %10 = vector.load %arg1[%c3, %c0_10, %c0_11] : memref<4x32x250xf32, #tpu.memory_space<vmem>>, vector<1x32x250xf32>
    %11 = vector.shape_cast %10 : vector<1x32x250xf32> to vector<32x250xf32>
    %cst_12 = arith.constant dense<0.000000e+00> : vector<32x20xf32>
    %12 = tpu.matmul %11, %0, %cst_12 {dimension_numbers = #tpu.dot_dimension_numbers<[1], [0], [0], [1], [0, 0, 1, 1], [], []>} : vector<32x250xf32>, vector<250x20xf32>, vector<32x20xf32> -> vector<32x20xf32>
    %13 = arith.maximumf %3, %6 : vector<32x20xf32>
    %14 = arith.maximumf %9, %12 : vector<32x20xf32>
    %15 = arith.maximumf %13, %14 : vector<32x20xf32>
    %c0_13 = arith.constant 0 : index
    %c0_14 = arith.constant 0 : index
    %16 = vector.load %arg3[%c0_13, %c0_14] : memref<1x20xf32, #tpu.memory_space<vmem>>, vector<1x20xf32>
    %17 = vector.broadcast %16 : vector<1x20xf32> to vector<32x20xf32>
    %18 = arith.addf %15, %17 : vector<32x20xf32>
    %cst_15 = arith.constant 0.000000e+00 : f32
    %19 = vector.broadcast %cst_15 : f32 to vector<32x20xf32>
    %20 = arith.maximumf %18, %19 : vector<32x20xf32>
    %c0_16 = arith.constant 0 : index
    %c0_17 = arith.constant 0 : index
    %21 = vector.load %arg4[%c0_16, %c0_17] : memref<32x20xf32, #tpu.memory_space<vmem>>, vector<32x20xf32>
    tpu.vector_store %arg4[%c0_16, %c0_17], %20 {strides = array<i32>} : memref<32x20xf32, #tpu.memory_space<vmem>>, vector<32x20xf32>,
    return
  }
  func.func @transform_0(%arg0: i32) -> (i32, i32, i32) {
    %c0_i32 = arith.constant 0 : i32
    %c0_i32_0 = arith.constant 0 : i32
    %c0_i32_1 = arith.constant 0 : i32
    return %c0_i32, %arg0, %c0_i32_0 : i32, i32, i32
  }
  func.func @transform_1(%arg0: i32) -> (i32, i32) {
    %c0_i32 = arith.constant 0 : i32
    %c0_i32_0 = arith.constant 0 : i32
    %c0_i32_1 = arith.constant 0 : i32
    return %c0_i32, %c0_i32_0 : i32, i32
  }
  func.func @transform_2(%arg0: i32) -> (i32, i32) {
    %c0_i32 = arith.constant 0 : i32
    %c0_i32_0 = arith.constant 0 : i32
    %c0_i32_1 = arith.constant 0 : i32
    return %c0_i32, %c0_i32_0 : i32, i32
  }
  func.func @transform_3(%arg0: i32) -> (i32, i32) {
    %c0_i32 = arith.constant 0 : i32
    %c0_i32_0 = arith.constant 0 : i32
    return %arg0, %c0_i32 : i32, i32
  }
}

module attributes {stable_mosaic.version = 11 : i64} {
  func.func @_mlp_kernel(%arg0: i32, %arg1: memref<8x320xf32, #tpu.memory_space<vmem>>, %arg2: memref<320x50xf32, #tpu.memory_space<vmem>>, %arg3: memref<1x50xf32, #tpu.memory_space<vmem>>, %arg4: memref<50x10xf32, #tpu.memory_space<vmem>>, %arg5: memref<1x10xf32, #tpu.memory_space<vmem>>, %arg6: memref<8x10xf32, #tpu.memory_space<vmem>>) attributes {dimension_semantics = [#tpu.dimension_semantics<parallel>], iteration_bounds = array<i64: 1>, scalar_prefetch = 0 : i64, scratch_operands = 0 : i64, tpu.core_type = #tpu.core_type<tc>, window_params = [{transform_indices = @transform_0, window_bounds = array<i64: 8, 320>}, {pipeline_mode = #tpu.pipeline_mode<synchronous>, transform_indices = @transform_1, window_bounds = array<i64: 320, 50>}, {pipeline_mode = #tpu.pipeline_mode<synchronous>, transform_indices = @transform_2, window_bounds = array<i64: 1, 50>}, {pipeline_mode = #tpu.pipeline_mode<synchronous>, transform_indices = @transform_3, window_bounds = array<i64: 50, 10>}, {pipeline_mode = #tpu.pipeline_mode<synchronous>, transform_indices = @transform_4, window_bounds = array<i64: 1, 10>}, {transform_indices = @transform_5, window_bounds = array<i64: 8, 10>}]} {
    %c0 = arith.constant 0 : index
    %c0_0 = arith.constant 0 : index
    %0 = vector.load %arg1[%c0, %c0_0] : memref<8x320xf32, #tpu.memory_space<vmem>>, vector<8x320xf32>
    %c0_1 = arith.constant 0 : index
    %c0_2 = arith.constant 0 : index
    %1 = vector.load %arg2[%c0_1, %c0_2] : memref<320x50xf32, #tpu.memory_space<vmem>>, vector<320x50xf32>
    %cst = arith.constant dense<0.000000e+00> : vector<8x50xf32>
    %2 = tpu.matmul %0, %1, %cst {dimension_numbers = #tpu.dot_dimension_numbers<[1], [0], [0], [1], [0, 0, 1, 1], [], []>} : vector<8x320xf32>, vector<320x50xf32>, vector<8x50xf32> -> vector<8x50xf32>
    %c0_3 = arith.constant 0 : index
    %c0_4 = arith.constant 0 : index
    %3 = vector.load %arg3[%c0_3, %c0_4] : memref<1x50xf32, #tpu.memory_space<vmem>>, vector<1x50xf32>
    %4 = vector.broadcast %3 : vector<1x50xf32> to vector<8x50xf32>
    %5 = arith.addf %2, %4 : vector<8x50xf32>
    %cst_5 = arith.constant 0.000000e+00 : f32
    %6 = vector.broadcast %cst_5 : f32 to vector<8x50xf32>
    %7 = arith.maximumf %5, %6 : vector<8x50xf32>
    %c0_6 = arith.constant 0 : index
    %c0_7 = arith.constant 0 : index
    %8 = vector.load %arg4[%c0_6, %c0_7] : memref<50x10xf32, #tpu.memory_space<vmem>>, vector<50x10xf32>
    %cst_8 = arith.constant dense<0.000000e+00> : vector<8x10xf32>
    %9 = tpu.matmul %7, %8, %cst_8 {dimension_numbers = #tpu.dot_dimension_numbers<[1], [0], [0], [1], [0, 0, 1, 1], [], []>} : vector<8x50xf32>, vector<50x10xf32>, vector<8x10xf32> -> vector<8x10xf32>
    %c0_9 = arith.constant 0 : index
    %c0_10 = arith.constant 0 : index
    %10 = vector.load %arg5[%c0_9, %c0_10] : memref<1x10xf32, #tpu.memory_space<vmem>>, vector<1x10xf32>
    %11 = vector.broadcast %10 : vector<1x10xf32> to vector<8x10xf32>
    %12 = arith.addf %9, %11 : vector<8x10xf32>
    %c0_11 = arith.constant 0 : index
    %c0_12 = arith.constant 0 : index
    %13 = vector.load %arg6[%c0_11, %c0_12] : memref<8x10xf32, #tpu.memory_space<vmem>>, vector<8x10xf32>
    tpu.vector_store %arg6[%c0_11, %c0_12], %12 {strides = array<i32>} : memref<8x10xf32, #tpu.memory_space<vmem>>, vector<8x10xf32>,
    return
  }
  func.func @transform_0(%arg0: i32) -> (i32, i32) {
    %c0_i32 = arith.constant 0 : i32
    %c0_i32_0 = arith.constant 0 : i32
    return %arg0, %c0_i32 : i32, i32
  }
  func.func @transform_1(%arg0: i32) -> (i32, i32) {
    %c0_i32 = arith.constant 0 : i32
    %c0_i32_0 = arith.constant 0 : i32
    %c0_i32_1 = arith.constant 0 : i32
    return %c0_i32, %c0_i32_0 : i32, i32
  }
  func.func @transform_2(%arg0: i32) -> (i32, i32) {
    %c0_i32 = arith.constant 0 : i32
    %c0_i32_0 = arith.constant 0 : i32
    %c0_i32_1 = arith.constant 0 : i32
    return %c0_i32, %c0_i32_0 : i32, i32
  }
  func.func @transform_3(%arg0: i32) -> (i32, i32) {
    %c0_i32 = arith.constant 0 : i32
    %c0_i32_0 = arith.constant 0 : i32
    %c0_i32_1 = arith.constant 0 : i32
    return %c0_i32, %c0_i32_0 : i32, i32
  }
  func.func @transform_4(%arg0: i32) -> (i32, i32) {
    %c0_i32 = arith.constant 0 : i32
    %c0_i32_0 = arith.constant 0 : i32
    %c0_i32_1 = arith.constant 0 : i32
    return %c0_i32, %c0_i32_0 : i32, i32
  }
  func.func @transform_5(%arg0: i32) -> (i32, i32) {
    %c0_i32 = arith.constant 0 : i32
    %c0_i32_0 = arith.constant 0 : i32
    return %arg0, %c0_i32 : i32, i32
  }
}

</mosaic_0001>

<bundles_post_ra>
// kernel: cnn_mnist_forward.3
= control target key start
LH: loop header
LB: loop body
LE: loop exit
PB: predicated region body
PF: predicated region fallthrough
CT: control target
= control target key end

     0   :  { %vm163_vm0 = vcmask 1040384   ;;  %vm54_vm1 = vcmask 203776   ;;  %vm2516_vm2 = vmmov 1   ;;  %vm1769_vm4 = vcmask 80896   ;;  %s3654_s1 = inlined_call_operand.vmem [shape: f32[25,10], index: 1, kind: input, shape index: {}]   ;;  %s3655_s0 = inlined_call_operand.vmem [shape: f32[4,288,25], index: 0, kind: input, shape index: {}]   ;;  %s3656_s2 = inlined_call_operand.vmem [shape: f32[1,10], index: 2, kind: input, shape index: {}]   ;;  %s3657_s3 = inlined_call_operand.vmem [shape: f32[288,10], index: 3, kind: output, shape index: {}]  }
   0x1   :  { %v14_v0 = vld [vmem:[%s3654_s1] sm:$0xff]  ;;  %v15_v1 = vld [vmem:[%s3654_s1 + $0x8] sm:$0xff]  ;;  %v16_v2 = vld [vmem:[%s3654_s1 + $0x10] sm:$0xff] }
   0x2   :  { %v2475_v3 = vpack.c.bf16 %v15_v1, %v14_v0  ;;  %v17_v4 = vld [vmem:[%s3654_s1 + $0x18] sm:$0x1]  ;;  %v18_v5 = vld [vmem:[%s3655_s0] sm:$0xff]  ;;  %vm2552_vm3 = vmpackc.low %vm163_vm0, %vm2516_vm2 }
   0x3   :  { %v2479_v6 = vpack.c.bf16 %v17_v4, %v16_v2  ;;  %2235 = vmatprep.mubr.msk.f32.mxu0 %vm54_vm1, %v18_v5  ;;  %v1847_v8 = vld [vmem:[%s3655_s0 + $0x120] sm:$0xff]  ;;  %v19_v9 = vld [vmem:[%s3655_s0 + $0x8] sm:$0xff]  ;;  %v20_v11 = vld [vmem:[%s3655_s0 + $0x10] sm:$0xff] }
   0x4   :  { %2476 = vmatprep.subr.bf16.mxu0 %v2475_v3  ;;  %2486 = vmatprep.subr.bf16.mxu1 %v2475_v3  ;;  %v1848_v10 = vld [vmem:[%s3655_s0 + $0x128] sm:$0xff]  ;;  %v1849_v12 = vld [vmem:[%s3655_s0 + $0x130] sm:$0xff]  ;;  %v21_v13 = vld [vmem:[%s3655_s0 + $0x18] sm:$0xff] }
   0x5   :  { %2478 = vmatpush3.bf16.msra.mxu0 %v2475_v3  ;;  %2488 = vmatpush3.bf16.msra.mxu1 %v2475_v3  ;;  %v1850_v14 = vld [vmem:[%s3655_s0 + $0x138] sm:$0xff]  ;;  %v22_v15 = vld [vmem:[%s3655_s0 + $0x20] sm:$0xff]  ;;  %v23_v17 = vld [vmem:[%s3655_s0 + $0x28] sm:$0xff] }
   0x6   :  { %2481 = vmatprep.subr.msk.bf16.mxu0 %vm2552_vm3, %v2479_v6  ;;  %2491 = vmatprep.subr.msk.bf16.mxu1 %vm2552_vm3, %v2479_v6  ;;  %v1851_v16 = vld [vmem:[%s3655_s0 + $0x140] sm:$0xff]  ;;  %v1852_v18 = vld [vmem:[%s3655_s0 + $0x148] sm:$0xff]  ;;  %v24_v19 = vld [vmem:[%s3655_s0 + $0x30] sm:$0xff] }
   0x7   :  { %2297 = vmatprep.mubr.msk.f32.mxu1 %vm54_vm1, %v1847_v8  ;;  %v1853_v20 = vld [vmem:[%s3655_s0 + $0x150] sm:$0xff]  ;;  %v25_v21 = vld [vmem:[%s3655_s0 + $0x38] sm:$0xff]  ;;  %v26_v23 = vld [vmem:[%s3655_s0 + $0x40] sm:$0xff] }
   0x8   :  { %v1854_v22 = vld [vmem:[%s3655_s0 + $0x158] sm:$0xff]  ;;  %v1855_v24 = vld [vmem:[%s3655_s0 + $0x160] sm:$0xff]  ;;  %v27_v25 = vld [vmem:[%s3655_s0 + $0x48] sm:$0xff] }
   0x9   :  { %2484 = vmatpush3.bf16.msk.msra.mxu0 %vm2552_vm3, %v2479_v6  ;;  %2494 = vmatpush3.bf16.msk.msra.mxu1 %vm2552_vm3, %v2479_v6  ;;  %v1856_v26 = vld [vmem:[%s3655_s0 + $0x168] sm:$0xff]  ;;  %v28_v27 = vld [vmem:[%s3655_s0 + $0x50] sm:$0xff]  ;;  %v29_v29 = vld [vmem:[%s3655_s0 + $0x58] sm:$0xff] }
   0xa   :  { %2496 = vmatprep.subr.bf16.mxu0 %v2475_v3  ;;  %2506 = vmatprep.subr.bf16.mxu1 %v2475_v3  ;;  %v1857_v28 = vld [vmem:[%s3655_s0 + $0x170] sm:$0xff]  ;;  %v1858_v30 = vld [vmem:[%s3655_s0 + $0x178] sm:$0xff]  ;;  %v30_v31 = vld [vmem:[%s3655_s0 + $0x60] sm:$0xff] }
   0xb   :  { %v1859_v32 = vld [vmem:[%s3655_s0 + $0x180] sm:$0xff]  ;;  %v31_v33 = vld [vmem:[%s3655_s0 + $0x68] sm:$0xff]  ;;  %v32_v35 = vld [vmem:[%s3655_s0 + $0x70] sm:$0xff] }
   0xc   :  { %2236 = vmatmul.mubr.msk.f32.vlgmr.msra.gmra.mrb[0].mxu0 %vm54_vm1, %v19_v9  ;;  %2298 = vmatmul.mubr.msk.f32.vlgmr.msra.gmra.mrb[0].mxu1 %vm54_vm1, %v1848_v10  ;;  %v1860_v34 = vld [vmem:[%s3655_s0 + $0x188] sm:$0xff]  ;;  %v1861_v36 = vld [vmem:[%s3655_s0 + $0x190] sm:$0xff]  ;;  %v33_v37 = vld [vmem:[%s3655_s0 + $0x78] sm:$0xff] }
   0xd   :  { %2498 = vmatpush3.bf16.msra.mxu0 %v2475_v3  ;;  %2508 = vmatpush3.bf16.msra.mxu1 %v2475_v3  ;;  %v1862_v38 = vld [vmem:[%s3655_s0 + $0x198] sm:$0xff]  ;;  %v34_v39 = vld [vmem:[%s3655_s0 + $0x80] sm:$0xff]  ;;  %v35_v41 = vld [vmem:[%s3655_s0 + $0x88] sm:$0xff] }
   0xe   :  { %2238 = vmatprep.mubr.msk.f32.mxu0 %vm54_vm1, %v20_v11  ;;  %2300 = vmatprep.mubr.msk.f32.mxu1 %vm54_vm1, %v1849_v12  ;;  %v1863_v40 = vld [vmem:[%s3655_s0 + $0x1a0] sm:$0xff]  ;;  %v1864_v42 = vld [vmem:[%s3655_s0 + $0x1a8] sm:$0xff]  ;;  %v36_v43 = vld [vmem:[%s3655_s0 + $0x90] sm:$0xff] }
   0xf   :  { %2501 = vmatprep.subr.msk.bf16.mxu0 %vm2552_vm3, %v2479_v6  ;;  %2511 = vmatprep.subr.msk.bf16.mxu1 %vm2552_vm3, %v2479_v6  ;;  %v1865_v44 = vld [vmem:[%s3655_s0 + $0x1b0] sm:$0xff]  ;;  %v37_v45 = vld [vmem:[%s3655_s0 + $0x98] sm:$0xff]  ;;  %v38_v47 = vld [vmem:[%s3655_s0 + $0xa0] sm:$0xff] }
  0x10   :  { %2239 = vmatmul.mubr.msk.f32.gmra.mrb[2].mxu0 %vm54_vm1, %v21_v13  ;;  %2301 = vmatmul.mubr.msk.f32.gmra.mrb[2].mxu1 %vm54_vm1, %v1850_v14  ;;  %v1866_v46 = vld [vmem:[%s3655_s0 + $0x1b8] sm:$0xff]  ;;  %v1867_v48 = vld [vmem:[%s3655_s0 + $0x1c0] sm:$0xff]  ;;  %v39_v49 = vld [vmem:[%s3655_s0 + $0xa8] sm:$0xff] }
  0x11   :  { %2241 = vmatprep.mubr.msk.f32.mxu0 %vm54_vm1, %v22_v15  ;;  %2303 = vmatprep.mubr.msk.f32.mxu1 %vm54_vm1, %v1851_v16  ;;  %v1868_v50 = vld [vmem:[%s3655_s0 + $0x1c8] sm:$0xff]  ;;  %v40_v51 = vld [vmem:[%s3655_s0 + $0xb0] sm:$0xff]  ;;  %v41_v53 = vld [vmem:[%s3655_s0 + $0xb8] sm:$0xff] }
  0x12   :  { %2504 = vmatpush3.bf16.msk.msra.mxu0 %vm2552_vm3, %v2479_v6  ;;  %2514 = vmatpush3.bf16.msk.msra.mxu1 %vm2552_vm3, %v2479_v6  ;;  %v1869_v52 = vld [vmem:[%s3655_s0 + $0x1d0] sm:$0xff]  ;;  %v1870_v54 = vld [vmem:[%s3655_s0 + $0x1d8] sm:$0xff]  ;;  %v42_v55 = vld [vmem:[%s3655_s0 + $0xc0] sm:$0xff] }
  0x13   :  { %v1871_v56 = vld [vmem:[%s3655_s0 + $0x1e0] sm:$0xff]  ;;  %v43_v57 = vld [vmem:[%s3655_s0 + $0xc8] sm:$0xff]  ;;  %v44_v59 = vld [vmem:[%s3655_s0 + $0xd0] sm:$0xff] }
  0x14   :  { %2242 = vmatmul.mubr.msk.f32.gmra.mrb[4].mxu0 %vm54_vm1, %v23_v17  ;;  %2304 = vmatmul.mubr.msk.f32.gmra.mrb[4].mxu1 %vm54_vm1, %v1852_v18  ;;  %v1872_v58 = vld [vmem:[%s3655_s0 + $0x1e8] sm:$0xff]  ;;  %v1873_v60 = vld [vmem:[%s3655_s0 + $0x1f0] sm:$0xff]  ;;  %v45_v61 = vld [vmem:[%s3655_s0 + $0xd8] sm:$0xff] }
  0x15   :  { %2244 = vmatprep.mubr.msk.f32.mxu0 %vm54_vm1, %v24_v19  ;;  %2306 = vmatprep.mubr.msk.f32.mxu1 %vm54_vm1, %v1853_v20  ;;  %v1874_v62 = vld [vmem:[%s3655_s0 + $0x1f8] sm:$0xff]  ;;  %v46_v63 = vld [vmem:[%s3655_s0 + $0xe0] sm:$0xff]  ;;  %v47_v1 = vld [vmem:[%s3655_s0 + $0xe8] sm:$0xff] }
  0x16   :  { %v1875_v0 = vld [vmem:[%s3655_s0 + $0x200] sm:$0xff]  ;;  %v1876_v2 = vld [vmem:[%s3655_s0 + $0x208] sm:$0xff]  ;;  %v48_v3 = vld [vmem:[%s3655_s0 + $0xf0] sm:$0xff] }
  0x17   :  { %v1877_v4 = vld [vmem:[%s3655_s0 + $0x210] sm:$0xff]  ;;  %v49_v5 = vld [vmem:[%s3655_s0 + $0xf8] sm:$0xff]  ;;  %v50_v7 = vld [vmem:[%s3655_s0 + $0x100] sm:$0xff] }
  0x18   :  { %2245 = vmatmul.mubr.msk.f32.gmra.mrb[6].mxu0 %vm54_vm1, %v25_v21  ;;  %2307 = vmatmul.mubr.msk.f32.gmra.mrb[6].mxu1 %vm54_vm1, %v1854_v22  ;;  %v1878_v6 = vld [vmem:[%s3655_s0 + $0x218] sm:$0xff]  ;;  %v1879_v8 = vld [vmem:[%s3655_s0 + $0x220] sm:$0xff]  ;;  %v51_v9 = vld [vmem:[%s3655_s0 + $0x108] sm:$0xff] }
  0x19   :  { %2247 = vmatprep.mubr.msk.f32.mxu0 %vm54_vm1, %v26_v23  ;;  %2309 = vmatprep.mubr.msk.f32.mxu1 %vm54_vm1, %v1855_v24  ;;  %v1880_v10 = vld [vmem:[%s3655_s0 + $0x228] sm:$0xff]  ;;  %v52_v11 = vld [vmem:[%s3655_s0 + $0x110] sm:$0xff]  ;;  %v53_v13 = vld [vmem:[%s3655_s0 + $0x118] sm:$0xff] }
  0x1a   :  { %v1881_v12 = vld [vmem:[%s3655_s0 + $0x230] sm:$0xff]  ;;  %v1882_v14 = vld [vmem:[%s3655_s0 + $0x238] sm:$0xff]  ;;  %v1920_v15 = vld [vmem:[%s3655_s0 + $0x240] sm:$0xff] }
  0x1b   :  { %v1993_v16 = vld [vmem:[%s3655_s0 + $0x360] sm:$0xff]  ;;  %v1921_v17 = vld [vmem:[%s3655_s0 + $0x248] sm:$0xff]  ;;  %v1922_v19 = vld [vmem:[%s3655_s0 + $0x250] sm:$0xff] }
  0x1c   :  { %2248 = vmatmul.mubr.msk.f32.gmra.mrb[8].mxu0 %vm54_vm1, %v27_v25  ;;  %2310 = vmatmul.mubr.msk.f32.gmra.mrb[8].mxu1 %vm54_vm1, %v1856_v26  ;;  %v1994_v18 = vld [vmem:[%s3655_s0 + $0x368] sm:$0xff]  ;;  %v1995_v20 = vld [vmem:[%s3655_s0 + $0x370] sm:$0xff]  ;;  %v1923_v21 = vld [vmem:[%s3655_s0 + $0x258] sm:$0xff] }
  0x1d   :  { %2250 = vmatprep.mubr.msk.f32.mxu0 %vm54_vm1, %v28_v27  ;;  %2312 = vmatprep.mubr.msk.f32.mxu1 %vm54_vm1, %v1857_v28  ;;  %v1996_v22 = vld [vmem:[%s3655_s0 + $0x378] sm:$0xff]  ;;  %v1924_v23 = vld [vmem:[%s3655_s0 + $0x260] sm:$0xff]  ;;  %v1925_v25 = vld [vmem:[%s3655_s0 + $0x268] sm:$0xff] }
  0x1e   :  { %v1997_v24 = vld [vmem:[%s3655_s0 + $0x380] sm:$0xff]  ;;  %v1998_v26 = vld [vmem:[%s3655_s0 + $0x388] sm:$0xff]  ;;  %v1926_v27 = vld [vmem:[%s3655_s0 + $0x270] sm:$0xff] }
  0x1f   :  { %v1999_v28 = vld [vmem:[%s3655_s0 + $0x390] sm:$0xff] }
  0x20   :  { %2251 = vmatmul.mubr.msk.f32.gmra.mrb[10].mxu0 %vm54_vm1, %v29_v29  ;;  %2313 = vmatmul.mubr.msk.f32.gmra.mrb[10].mxu1 %vm54_vm1, %v1858_v30  ;;  %v1927_v29 = vld [vmem:[%s3655_s0 + $0x278] sm:$0xff] }
  0x21   :  { %2253 = vmatprep.mubr.msk.f32.mxu0 %vm54_vm1, %v30_v31  ;;  %2315 = vmatprep.mubr.msk.f32.mxu1 %vm54_vm1, %v1859_v32  ;;  %v2000_v30 = vld [vmem:[%s3655_s0 + $0x398] sm:$0xff]  ;;  %v1928_v31 = vld [vmem:[%s3655_s0 + $0x280] sm:$0xff] }
  0x22   :  { %v2001_v32 = vld [vmem:[%s3655_s0 + $0x3a0] sm:$0xff] }
  0x24   :  { %2254 = vmatmul.mubr.msk.f32.gmra.mrb[12].mxu0 %vm54_vm1, %v31_v33  ;;  %2316 = vmatmul.mubr.msk.f32.gmra.mrb[12].mxu1 %vm54_vm1, %v1860_v34  ;;  %v1929_v33 = vld [vmem:[%s3655_s0 + $0x288] sm:$0xff] }
  0x25   :  { %2256 = vmatprep.mubr.msk.f32.mxu0 %vm54_vm1, %v32_v35  ;;  %2318 = vmatprep.mubr.msk.f32.mxu1 %vm54_vm1, %v1861_v36  ;;  %v2002_v34 = vld [vmem:[%s3655_s0 + $0x3a8] sm:$0xff]  ;;  %v1930_v35 = vld [vmem:[%s3655_s0 + $0x290] sm:$0xff] }
  0x26   :  { %v2003_v36 = vld [vmem:[%s3655_s0 + $0x3b0] sm:$0xff] }
  0x28   :  { %2257 = vmatmul.mubr.msk.f32.gmra.mrb[14].mxu0 %vm54_vm1, %v33_v37  ;;  %2319 = vmatmul.mubr.msk.f32.gmra.mrb[14].mxu1 %vm54_vm1, %v1862_v38  ;;  %v1931_v37 = vld [vmem:[%s3655_s0 + $0x298] sm:$0xff] }
  0x29   :  { %2259 = vmatprep.mubr.msk.f32.mxu0 %vm54_vm1, %v34_v39  ;;  %2321 = vmatprep.mubr.msk.f32.mxu1 %vm54_vm1, %v1863_v40  ;;  %v2004_v38 = vld [vmem:[%s3655_s0 + $0x3b8] sm:$0xff]  ;;  %v1932_v39 = vld [vmem:[%s3655_s0 + $0x2a0] sm:$0xff] }
  0x2a   :  { %v2005_v40 = vld [vmem:[%s3655_s0 + $0x3c0] sm:$0xff] }
  0x2c   :  { %2260 = vmatmul.mubr.msk.f32.gmra.mrb[16].mxu0 %vm54_vm1, %v35_v41  ;;  %2322 = vmatmul.mubr.msk.f32.gmra.mrb[16].mxu1 %vm54_vm1, %v1864_v42  ;;  %v1933_v41 = vld [vmem:[%s3655_s0 + $0x2a8] sm:$0xff] }
  0x2d   :  { %2262 = vmatprep.mubr.msk.f32.mxu0 %vm54_vm1, %v36_v43  ;;  %2324 = vmatprep.mubr.msk.f32.mxu1 %vm54_vm1, %v1865_v44  ;;  %v2006_v42 = vld [vmem:[%s3655_s0 + $0x3c8] sm:$0xff]  ;;  %v1934_v43 = vld [vmem:[%s3655_s0 + $0x2b0] sm:$0xff] }
  0x2e   :  { %v2007_v44 = vld [vmem:[%s3655_s0 + $0x3d0] sm:$0xff] }
  0x30   :  { %2263 = vmatmul.mubr.msk.f32.gmra.mrb[18].mxu0 %vm54_vm1, %v37_v45  ;;  %2325 = vmatmul.mubr.msk.f32.gmra.mrb[18].mxu1 %vm54_vm1, %v1866_v46  ;;  %v1935_v45 = vld [vmem:[%s3655_s0 + $0x2b8] sm:$0xff] }
  0x31   :  { %2265 = vmatprep.mubr.msk.f32.mxu0 %vm54_vm1, %v38_v47  ;;  %2327 = vmatprep.mubr.msk.f32.mxu1 %vm54_vm1, %v1867_v48  ;;  %v2008_v46 = vld [vmem:[%s3655_s0 + $0x3d8] sm:$0xff]  ;;  %v1936_v47 = vld [vmem:[%s3655_s0 + $0x2c0] sm:$0xff] }
  0x32   :  { %v2009_v48 = vld [vmem:[%s3655_s0 + $0x3e0] sm:$0xff] }
  0x34   :  { %2266 = vmatmul.mubr.msk.f32.gmra.mrb[20].mxu0 %vm54_vm1, %v39_v49  ;;  %2328 = vmatmul.mubr.msk.f32.gmra.mrb[20].mxu1 %vm54_vm1, %v1868_v50  ;;  %v1937_v49 = vld [vmem:[%s3655_s0 + $0x2c8] sm:$0xff] }
  0x35   :  { %2268 = vmatprep.mubr.msk.f32.mxu0 %vm54_vm1, %v40_v51  ;;  %2330 = vmatprep.mubr.msk.f32.mxu1 %vm54_vm1, %v1869_v52  ;;  %v2010_v50 = vld [vmem:[%s3655_s0 + $0x3e8] sm:$0xff]  ;;  %v1938_v51 = vld [vmem:[%s3655_s0 + $0x2d0] sm:$0xff] }
  0x36   :  { %v2011_v52 = vld [vmem:[%s3655_s0 + $0x3f0] sm:$0xff] }
  0x38   :  { %2269 = vmatmul.mubr.msk.f32.gmra.mrb[22].mxu0 %vm54_vm1, %v41_v53  ;;  %2331 = vmatmul.mubr.msk.f32.gmra.mrb[22].mxu1 %vm54_vm1, %v1870_v54  ;;  %v1939_v53 = vld [vmem:[%s3655_s0 + $0x2d8] sm:$0xff] }
  0x39   :  { %2271 = vmatprep.mubr.msk.f32.mxu0 %vm54_vm1, %v42_v55  ;;  %2333 = vmatprep.mubr.msk.f32.mxu1 %vm54_vm1, %v1871_v56  ;;  %v2012_v54 = vld [vmem:[%s3655_s0 + $0x3f8] sm:$0xff]  ;;  %v1940_v55 = vld [vmem:[%s3655_s0 + $0x2e0] sm:$0xff] }
  0x3a   :  { %v2013_v56 = vld [vmem:[%s3655_s0 + $0x400] sm:$0xff] }
  0x3c   :  { %2272 = vmatmul.mubr.msk.f32.gmra.mrb[24].mxu0 %vm54_vm1, %v43_v57  ;;  %2334 = vmatmul.mubr.msk.f32.gmra.mrb[24].mxu1 %vm54_vm1, %v1872_v58  ;;  %v1941_v57 = vld [vmem:[%s3655_s0 + $0x2e8] sm:$0xff] }
  0x3d   :  { %2274 = vmatprep.mubr.msk.f32.mxu0 %vm54_vm1, %v44_v59  ;;  %2336 = vmatprep.mubr.msk.f32.mxu1 %vm54_vm1, %v1873_v60  ;;  %v2014_v58 = vld [vmem:[%s3655_s0 + $0x408] sm:$0xff]  ;;  %v1942_v59 = vld [vmem:[%s3655_s0 + $0x2f0] sm:$0xff] }
  0x3e   :  { %v2015_v60 = vld [vmem:[%s3655_s0 + $0x410] sm:$0xff] }
  0x40   :  { %2275 = vmatmul.mubr.msk.f32.gmra.mrb[26].mxu0 %vm54_vm1, %v45_v61  ;;  %2337 = vmatmul.mubr.msk.f32.gmra.mrb[26].mxu1 %vm54_vm1, %v1874_v62  ;;  %v1943_v61 = vld [vmem:[%s3655_s0 + $0x2f8] sm:$0xff] }
  0x41   :  { %2277 = vmatprep.mubr.msk.f32.mxu0 %vm54_vm1, %v46_v63  ;;  %2339 = vmatprep.mubr.msk.f32.mxu1 %vm54_vm1, %v1875_v0  ;;  %v2016_v62 = vld [vmem:[%s3655_s0 + $0x418] sm:$0xff]  ;;  %v1944_v63 = vld [vmem:[%s3655_s0 + $0x300] sm:$0xff] }
  0x42   :  { %v2017_v0 = vld [vmem:[%s3655_s0 + $0x420] sm:$0xff] }
  0x44   :  { %2278 = vmatmul.mubr.msk.f32.gmra.mrb[28].mxu0 %vm54_vm1, %v47_v1  ;;  %2340 = vmatmul.mubr.msk.f32.gmra.mrb[28].mxu1 %vm54_vm1, %v1876_v2  ;;  %v1945_v1 = vld [vmem:[%s3655_s0 + $0x308] sm:$0xff] }
  0x45   :  { %2280 = vmatprep.mubr.msk.f32.mxu0 %vm54_vm1, %v48_v3  ;;  %2342 = vmatprep.mubr.msk.f32.mxu1 %vm54_vm1, %v1877_v4  ;;  %v2018_v2 = vld [vmem:[%s3655_s0 + $0x428] sm:$0xff]  ;;  %v1946_v3 = vld [vmem:[%s3655_s0 + $0x310] sm:$0xff] }
  0x46   :  { %v2019_v4 = vld [vmem:[%s3655_s0 + $0x430] sm:$0xff] }
  0x48   :  { %2281 = vmatmul.mubr.msk.f32.gmra.mrb[30].mxu0 %vm54_vm1, %v49_v5  ;;  %2343 = vmatmul.mubr.msk.f32.gmra.mrb[30].mxu1 %vm54_vm1, %v1878_v6  ;;  %v1947_v5 = vld [vmem:[%s3655_s0 + $0x318] sm:$0xff] }
  0x49   :  { %2283 = vmatprep.mubr.msk.f32.mxu0 %vm54_vm1, %v50_v7  ;;  %2345 = vmatprep.mubr.msk.f32.mxu1 %vm54_vm1, %v1879_v8  ;;  %v2020_v6 = vld [vmem:[%s3655_s0 + $0x438] sm:$0xff]  ;;  %v1948_v7 = vld [vmem:[%s3655_s0 + $0x320] sm:$0xff] }
  0x4a   :  { %v2021_v8 = vld [vmem:[%s3655_s0 + $0x440] sm:$0xff] }
  0x4c   :  { %2284 = vmatmul.mubr.msk.f32.gmra.mrb[32].mxu0 %vm54_vm1, %v51_v9  ;;  %2346 = vmatmul.mubr.msk.f32.gmra.mrb[32].mxu1 %vm54_vm1, %v1880_v10  ;;  %v1949_v9 = vld [vmem:[%s3655_s0 + $0x328] sm:$0xff] }
  0x4d   :  { %2286 = vmatprep.mubr.msk.f32.mxu0 %vm54_vm1, %v52_v11  ;;  %2348 = vmatprep.mubr.msk.f32.mxu1 %vm54_vm1, %v1881_v12  ;;  %v2022_v10 = vld [vmem:[%s3655_s0 + $0x448] sm:$0xff]  ;;  %v1950_v11 = vld [vmem:[%s3655_s0 + $0x330] sm:$0xff] }
  0x4e   :  { %v2023_v12 = vld [vmem:[%s3655_s0 + $0x450] sm:$0xff] }
  0x50   :  { %2287 = vmatmul.mubr.msk.f32.gmra.mrb[34].mxu0 %vm54_vm1, %v53_v13  ;;  %2349 = vmatmul.mubr.msk.f32.gmra.mrb[34].mxu1 %vm54_vm1, %v1882_v14  ;;  %v1951_v13 = vld [vmem:[%s3655_s0 + $0x338] sm:$0xff] }
  0x51   :  { %2359 = vmatprep.mubr.msk.f32.mxu0 %vm54_vm1, %v1920_v15  ;;  %2421 = vmatprep.mubr.msk.f32.mxu1 %vm54_vm1, %v1993_v16  ;;  %v2024_v14 = vld [vmem:[%s3655_s0 + $0x458] sm:$0xff]  ;;  %v1952_v15 = vld [vmem:[%s3655_s0 + $0x340] sm:$0xff] }
  0x52   :  { %v2025_v16 = vld [vmem:[%s3655_s0 + $0x460] sm:$0xff] }
  0x54   :  { %2360 = vmatmul.mubr.msk.f32.vlgmr.msra.gmra.mrb[36].mxu0 %vm54_vm1, %v1921_v17  ;;  %2422 = vmatmul.mubr.msk.f32.vlgmr.msra.gmra.mrb[36].mxu1 %vm54_vm1, %v1994_v18  ;;  %v1953_v17 = vld [vmem:[%s3655_s0 + $0x348] sm:$0xff] }
  0x55   :  { %2362 = vmatprep.mubr.msk.f32.mxu0 %vm54_vm1, %v1922_v19  ;;  %2424 = vmatprep.mubr.msk.f32.mxu1 %vm54_vm1, %v1995_v20  ;;  %v2026_v18 = vld [vmem:[%s3655_s0 + $0x468] sm:$0xff]  ;;  %v1954_v19 = vld [vmem:[%s3655_s0 + $0x350] sm:$0xff] }
  0x56   :  { %v2027_v20 = vld [vmem:[%s3655_s0 + $0x470] sm:$0xff] }
  0x58   :  { %2363 = vmatmul.mubr.msk.f32.gmra.mrb[38].mxu0 %vm54_vm1, %v1923_v21  ;;  %2425 = vmatmul.mubr.msk.f32.gmra.mrb[38].mxu1 %vm54_vm1, %v1996_v22  ;;  %v1955_v21 = vld [vmem:[%s3655_s0 + $0x358] sm:$0xff] }
  0x59   :  { %2365 = vmatprep.mubr.msk.f32.mxu0 %vm54_vm1, %v1924_v23  ;;  %2427 = vmatprep.mubr.msk.f32.mxu1 %vm54_vm1, %v1997_v24  ;;  %v2028_v22 = vld [vmem:[%s3655_s0 + $0x478] sm:$0xff] }
  0x5c   :  { %2366 = vmatmul.mubr.msk.f32.gmra.mrb[40].mxu0 %vm54_vm1, %v1925_v25  ;;  %2428 = vmatmul.mubr.msk.f32.gmra.mrb[40].mxu1 %vm54_vm1, %v1998_v26 }
  0x5d   :  { %2368 = vmatprep.mubr.msk.f32.mxu0 %vm54_vm1, %v1926_v27  ;;  %2430 = vmatprep.mubr.msk.f32.mxu1 %vm54_vm1, %v1999_v28 }
  0x60   :  { %2369 = vmatmul.mubr.msk.f32.gmra.mrb[42].mxu0 %vm54_vm1, %v1927_v29  ;;  %2431 = vmatmul.mubr.msk.f32.gmra.mrb[42].mxu1 %vm54_vm1, %v2000_v30 }
  0x61   :  { %2371 = vmatprep.mubr.msk.f32.mxu0 %vm54_vm1, %v1928_v31  ;;  %2433 = vmatprep.mubr.msk.f32.mxu1 %vm54_vm1, %v2001_v32 }
  0x64   :  { %2372 = vmatmul.mubr.msk.f32.gmra.mrb[44].mxu0 %vm54_vm1, %v1929_v33  ;;  %2434 = vmatmul.mubr.msk.f32.gmra.mrb[44].mxu1 %vm54_vm1, %v2002_v34 }
  0x65   :  { %2374 = vmatprep.mubr.msk.f32.mxu0 %vm54_vm1, %v1930_v35  ;;  %2436 = vmatprep.mubr.msk.f32.mxu1 %vm54_vm1, %v2003_v36 }
  0x68   :  { %2375 = vmatmul.mubr.msk.f32.gmra.mrb[46].mxu0 %vm54_vm1, %v1931_v37  ;;  %2437 = vmatmul.mubr.msk.f32.gmra.mrb[46].mxu1 %vm54_vm1, %v2004_v38 }
  0x69   :  { %2377 = vmatprep.mubr.msk.f32.mxu0 %vm54_vm1, %v1932_v39  ;;  %2439 = vmatprep.mubr.msk.f32.mxu1 %vm54_vm1, %v2005_v40 }
  0x6c   :  { %2378 = vmatmul.mubr.msk.f32.gmra.mrb[48].mxu0 %vm54_vm1, %v1933_v41  ;;  %2440 = vmatmul.mubr.msk.f32.gmra.mrb[48].mxu1 %vm54_vm1, %v2006_v42 }
  0x6d   :  { %2380 = vmatprep.mubr.msk.f32.mxu0 %vm54_vm1, %v1934_v43  ;;  %2442 = vmatprep.mubr.msk.f32.mxu1 %vm54_vm1, %v2007_v44 }
  0x70   :  { %2381 = vmatmul.mubr.msk.f32.gmra.mrb[50].mxu0 %vm54_vm1, %v1935_v45  ;;  %2443 = vmatmul.mubr.msk.f32.gmra.mrb[50].mxu1 %vm54_vm1, %v2008_v46 }
  0x71   :  { %2383 = vmatprep.mubr.msk.f32.mxu0 %vm54_vm1, %v1936_v47  ;;  %2445 = vmatprep.mubr.msk.f32.mxu1 %vm54_vm1, %v2009_v48 }
  0x74   :  { %2384 = vmatmul.mubr.msk.f32.gmra.mrb[52].mxu0 %vm54_vm1, %v1937_v49  ;;  %2446 = vmatmul.mubr.msk.f32.gmra.mrb[52].mxu1 %vm54_vm1, %v2010_v50 }
  0x75   :  { %2386 = vmatprep.mubr.msk.f32.mxu0 %vm54_vm1, %v1938_v51  ;;  %2448 = vmatprep.mubr.msk.f32.mxu1 %vm54_vm1, %v2011_v52 }
  0x78   :  { %2387 = vmatmul.mubr.msk.f32.gmra.mrb[54].mxu0 %vm54_vm1, %v1939_v53  ;;  %2449 = vmatmul.mubr.msk.f32.gmra.mrb[54].mxu1 %vm54_vm1, %v2012_v54 }
  0x79   :  { %2389 = vmatprep.mubr.msk.f32.mxu0 %vm54_vm1, %v1940_v55  ;;  %2451 = vmatprep.mubr.msk.f32.mxu1 %vm54_vm1, %v2013_v56 }
  0x7c   :  { %2390 = vmatmul.mubr.msk.f32.gmra.mrb[56].mxu0 %vm54_vm1, %v1941_v57  ;;  %2452 = vmatmul.mubr.msk.f32.gmra.mrb[56].mxu1 %vm54_vm1, %v2014_v58 }
  0x7d   :  { %2392 = vmatprep.mubr.msk.f32.mxu0 %vm54_vm1, %v1942_v59  ;;  %2454 = vmatprep.mubr.msk.f32.mxu1 %vm54_vm1, %v2015_v60 }
  0x80   :  { %2393 = vmatmul.mubr.msk.f32.gmra.mrb[58].mxu0 %vm54_vm1, %v1943_v61  ;;  %2455 = vmatmul.mubr.msk.f32.gmra.mrb[58].mxu1 %vm54_vm1, %v2016_v62 }
  0x81   :  { %2395 = vmatprep.mubr.msk.f32.mxu0 %vm54_vm1, %v1944_v63  ;;  %2457 = vmatprep.mubr.msk.f32.mxu1 %vm54_vm1, %v2017_v0 }
  0x84   :  { %2396 = vmatmul.mubr.msk.f32.gmra.mrb[60].mxu0 %vm54_vm1, %v1945_v1  ;;  %2458 = vmatmul.mubr.msk.f32.gmra.mrb[60].mxu1 %vm54_vm1, %v2018_v2 }
  0x85   :  { %2398 = vmatprep.mubr.msk.f32.mxu0 %vm54_vm1, %v1946_v3  ;;  %2460 = vmatprep.mubr.msk.f32.mxu1 %vm54_vm1, %v2019_v4 }
  0x88   :  { %2399 = vmatmul.mubr.msk.f32.gmra.mrb[62].mxu0 %vm54_vm1, %v1947_v5  ;;  %2461 = vmatmul.mubr.msk.f32.gmra.mrb[62].mxu1 %vm54_vm1, %v2020_v6 }
  0x89   :  { %2401 = vmatprep.mubr.msk.f32.mxu0 %vm54_vm1, %v1948_v7  ;;  %2463 = vmatprep.mubr.msk.f32.mxu1 %vm54_vm1, %v2021_v8 }
  0x8c   :  { %2402 = vmatmul.mubr.msk.f32.gmra.mrb[64].mxu0 %vm54_vm1, %v1949_v9  ;;  %2464 = vmatmul.mubr.msk.f32.gmra.mrb[64].mxu1 %vm54_vm1, %v2022_v10 }
  0x8d   :  { %2404 = vmatprep.mubr.msk.f32.mxu0 %vm54_vm1, %v1950_v11  ;;  %2466 = vmatprep.mubr.msk.f32.mxu1 %vm54_vm1, %v2023_v12 }
  0x90   :  { %2405 = vmatmul.mubr.msk.f32.gmra.mrb[66].mxu0 %vm54_vm1, %v1951_v13  ;;  %2467 = vmatmul.mubr.msk.f32.gmra.mrb[66].mxu1 %vm54_vm1, %v2024_v14 }
  0x91   :  { %2407 = vmatprep.mubr.msk.f32.mxu0 %vm54_vm1, %v1952_v15  ;;  %2469 = vmatprep.mubr.msk.f32.mxu1 %vm54_vm1, %v2025_v16  ;;  %v3364_v15 = vld [vmem:[%s3656_s2] ss:$0 sm:$0xff] }
  0x94   :  { %2408 = vmatmul.mubr.msk.f32.gmra.mrb[68].mxu0 %vm54_vm1, %v1953_v17  ;;  %2470 = vmatmul.mubr.msk.f32.gmra.mrb[68].mxu1 %vm54_vm1, %v2026_v18 }
  0x95   :  { %2410 = vmatprep.mubr.msk.f32.mxu0 %vm54_vm1, %v1954_v19  ;;  %2472 = vmatprep.mubr.msk.f32.mxu1 %vm54_vm1, %v2027_v20 }
  0x98   :  { %2411 = vmatmul.mubr.msk.f32.gmra.mrb[70].mxu0 %vm54_vm1, %v1955_v21  ;;  %2473 = vmatmul.mubr.msk.f32.gmra.mrb[70].mxu1 %vm54_vm1, %v2028_v22 }
  0xdf   :  { %v3145_v23 = vpop.f32.mrb[0].mxu0  ;;  %v3147_v24 = vpop.f32.mrb[0].mxu1 }
  0xe0   :  { %v3151_v26 = vpop.f32.mrb[1].mxu0  ;;  %v3153_v27 = vpop.f32.mrb[1].mxu1  ;;  %v3710_v18 = vmax.f32 %v3145_v23, %v3147_v24 }
  0xe3   :  { %v3157_v29 = vpop.f32.mrb[2].mxu0  ;;  %v3159_v30 = vpop.f32.mrb[2].mxu1 }
  0xe4   :  { %v3163_v32 = vpop.f32.mrb[3].mxu0  ;;  %v3165_v33 = vpop.f32.mrb[3].mxu1  ;;  %v3712_v23 = vmax.f32 %v3157_v29, %v3159_v30 }
  0xe7   :  { %v3169_v35 = vpop.f32.mrb[4].mxu0  ;;  %v3171_v36 = vpop.f32.mrb[4].mxu1 }
  0xe8   :  { %v3175_v38 = vpop.f32.mrb[5].mxu0  ;;  %v3177_v39 = vpop.f32.mrb[5].mxu1 }
  0xeb   :  { %v3181_v41 = vpop.f32.mrb[6].mxu0  ;;  %v3183_v42 = vpop.f32.mrb[6].mxu1 }
  0xec   :  { %v3187_v44 = vpop.f32.mrb[7].mxu0  ;;  %v3189_v45 = vpop.f32.mrb[7].mxu1 }
  0xef   :  { %v3193_v47 = vpop.f32.mrb[8].mxu0  ;;  %v3195_v48 = vpop.f32.mrb[8].mxu1 }
  0xf0   :  { %v3199_v50 = vpop.f32.mrb[9].mxu0  ;;  %v3201_v51 = vpop.f32.mrb[9].mxu1 }
  0xf3   :  { %v3205_v53 = vpop.f32.mrb[10].mxu0  ;;  %v3207_v54 = vpop.f32.mrb[10].mxu1 }
  0xf4   :  { %v3211_v56 = vpop.f32.mrb[11].mxu0  ;;  %v3213_v57 = vpop.f32.mrb[11].mxu1 }
  0xf7   :  { %v3217_v59 = vpop.f32.mrb[12].mxu0  ;;  %v3219_v60 = vpop.f32.mrb[12].mxu1 }
  0xf8   :  { %v3223_v62 = vpop.f32.mrb[13].mxu0  ;;  %v3225_v63 = vpop.f32.mrb[13].mxu1 }
  0xfb   :  { %v3229_v1 = vpop.f32.mrb[14].mxu0  ;;  %v3231_v2 = vpop.f32.mrb[14].mxu1 }
  0xfc   :  { %v3235_v4 = vpop.f32.mrb[15].mxu0  ;;  %v3237_v5 = vpop.f32.mrb[15].mxu1 }
  0xff   :  { %v3241_v7 = vpop.f32.mrb[16].mxu0  ;;  %v3243_v8 = vpop.f32.mrb[16].mxu1 }
 0x100   :  { %v3247_v10 = vpop.f32.mrb[17].mxu0  ;;  %v3249_v11 = vpop.f32.mrb[17].mxu1 }
 0x103   :  { %v3253_v13 = vpop.f32.mrb[18].mxu0  ;;  %v3255_v14 = vpop.f32.mrb[18].mxu1 }
 0x104   :  { %v3259_v16 = vpop.f32.mrb[19].mxu0  ;;  %v3261_v17 = vpop.f32.mrb[19].mxu1 }
 0x107   :  { %v3265_v19 = vpop.f32.mrb[20].mxu0  ;;  %v3267_v20 = vpop.f32.mrb[20].mxu1 }
 0x108   :  { %v3271_v22 = vpop.f32.mrb[21].mxu0  ;;  %v3273_v12 = vpop.f32.mrb[21].mxu1 }
 0x10b   :  { %v3277_v9 = vpop.f32.mrb[22].mxu0  ;;  %v3279_v6 = vpop.f32.mrb[22].mxu1 }
 0x10c   :  { %v3283_v3 = vpop.f32.mrb[23].mxu0  ;;  %v3285_v0 = vpop.f32.mrb[23].mxu1 }
 0x10d   :  { %3685 = vst [vmem:[#allocation2_spill] sm:$0xff] %v3285_v0 }
 0x10f   :  { %v3289_v61 = vpop.f32.mrb[24].mxu0  ;;  %v3291_v58 = vpop.f32.mrb[24].mxu1 }
 0x110   :  { %3686 = vst [vmem:[#allocation3_spill] sm:$0xff] %v3289_v61  ;;  %3687 = vst [vmem:[#allocation4_spill] sm:$0xff] %v3291_v58  ;;  %v3295_v55 = vpop.f32.mrb[25].mxu0  ;;  %v3297_v52 = vpop.f32.mrb[25].mxu1 }
 0x111   :  { %3688 = vst [vmem:[#allocation5_spill] sm:$0xff] %v3295_v55  ;;  %3689 = vst [vmem:[#allocation6_spill] sm:$0xff] %v3297_v52 }
 0x113   :  { %v3301_v49 = vpop.f32.mrb[26].mxu0  ;;  %v3303_v46 = vpop.f32.mrb[26].mxu1 }
 0x114   :  { %3690 = vst [vmem:[#allocation7_spill] sm:$0xff] %v3301_v49  ;;  %3691 = vst [vmem:[#allocation8_spill] sm:$0xff] %v3303_v46  ;;  %v3307_v43 = vpop.f32.mrb[27].mxu0  ;;  %v3309_v40 = vpop.f32.mrb[27].mxu1 }
 0x115   :  { %3692 = vst [vmem:[#allocation9_spill] sm:$0xff] %v3307_v43  ;;  %3693 = vst [vmem:[#allocation10_spill] sm:$0xff] %v3309_v40 }
 0x117   :  { %v3313_v37 = vpop.f32.mrb[28].mxu0  ;;  %v3315_v34 = vpop.f32.mrb[28].mxu1 }
 0x118   :  { %3694 = vst [vmem:[#allocation11_spill] sm:$0xff] %v3313_v37  ;;  %3695 = vst [vmem:[#allocation12_spill] sm:$0xff] %v3315_v34  ;;  %v3319_v31 = vpop.f32.mrb[29].mxu0  ;;  %v3321_v28 = vpop.f32.mrb[29].mxu1 }
 0x119   :  { %3696 = vst [vmem:[#allocation13_spill] sm:$0xff] %v3319_v31  ;;  %3697 = vst [vmem:[#allocation14_spill] sm:$0xff] %v3321_v28 }
 0x11b   :  { %v3325_v25 = vpop.f32.mrb[30].mxu0  ;;  %v3327_v46 = vpop.f32.mrb[30].mxu1 }
 0x11c   :  { %3698 = vst [vmem:[#allocation15_spill] sm:$0xff] %v3325_v25  ;;  %3699 = vst [vmem:[#allocation16_spill] sm:$0xff] %v3327_v46  ;;  %v3331_v40 = vpop.f32.mrb[31].mxu0  ;;  %v3333_v43 = vpop.f32.mrb[31].mxu1 }
 0x11d   :  { %3700 = vst [vmem:[#allocation17_spill] sm:$0xff] %v3331_v40  ;;  %3701 = vst [vmem:[#allocation18_spill] sm:$0xff] %v3333_v43 }
 0x11f   :  { %v3337_v34 = vpop.f32.mrb[32].mxu0  ;;  %v3339_v37 = vpop.f32.mrb[32].mxu1 }
 0x120   :  { %3702 = vst [vmem:[#allocation19_spill] sm:$0xff] %v3337_v34  ;;  %3703 = vst [vmem:[#allocation20_spill] sm:$0xff] %v3339_v37  ;;  %v3343_v28 = vpop.f32.mrb[33].mxu0  ;;  %v3345_v31 = vpop.f32.mrb[33].mxu1 }
 0x121   :  { %3704 = vst [vmem:[#allocation21_spill] sm:$0xff] %v3343_v28  ;;  %3705 = vst [vmem:[#allocation22_spill] sm:$0xff] %v3345_v31 }
 0x123   :  { %v3349_v46 = vpop.f32.mrb[34].mxu0  ;;  %v3351_v25 = vpop.f32.mrb[34].mxu1 }
 0x124   :  { %3706 = vst [vmem:[#allocation23_spill] sm:$0xff] %v3349_v46  ;;  %3707 = vst [vmem:[#allocation24_spill] sm:$0xff] %v3351_v25  ;;  %v3355_v43 = vpop.f32.mrb[35].mxu0  ;;  %v3357_v40 = vpop.f32.mrb[35].mxu1  ;;  %v3711_v46 = vmax.f32 %v3151_v26, %v3153_v27  ;;  %v3713_v26 = vmax.f32 %v3163_v32, %v3165_v33  ;;  %v3714_v33 = vmax.f32 %v3169_v35, %v3171_v36 }
 0x125   :  { %3708 = vst [vmem:[#allocation25_spill] sm:$0xff] %v3355_v43  ;;  %3709 = vst [vmem:[#allocation26_spill] sm:$0xff] %v3357_v40 }
 0x127   :  { %v2361_v37 = vpop.f32.mrb[36].mxu0  ;;  %v2423_v34 = vpop.f32.mrb[36].mxu1 }
 0x128   :  { %v1619_v49 = vmax.f32 %v2361_v37, %v2423_v34  ;;  %v1013_v52 = vpop.f32.mrb[37].mxu0  ;;  %v1403_v55 = vpop.f32.mrb[37].mxu1 }
 0x129   :  { %v1618_v31 = vmax.f32 %v1013_v52, %v1403_v55 }
 0x12a   :  { %v1655_v25 = vmax.f32 %v3710_v18, %v1619_v49 }
 0x12b   :  { %v1654_v28 = vmax.f32 %v3711_v46, %v1618_v31  ;;  %v2364_v21 = vpop.f32.mrb[38].mxu0  ;;  %v2426_v40 = vpop.f32.mrb[38].mxu1 }
 0x12c   :  { %v1698_v34 = vadd.f32 %v3364_v15, %v1655_v25  ;;  %v1621_v37 = vmax.f32 %v2364_v21, %v2426_v40  ;;  %v1023_v43 = vpop.f32.mrb[39].mxu0  ;;  %v1413_v58 = vpop.f32.mrb[39].mxu1 }
 0x12d   :  { %v1697_v61 = vadd.f32 %v3364_v15, %v1654_v28  ;;  %v1620_v0 = vmax.f32 %v1023_v43, %v1413_v58 }
 0x12e   :  { %v1734_v52 = vmax.f32 %v1698_v34, 0.0  ;;  %v1657_v24 = vmax.f32 %v3712_v23, %v1621_v37 }
 0x12f   :  { %v1733_v49 = vmax.f32 %v1697_v61, 0.0  ;;  %v1656_v27 = vmax.f32 %v3713_v26, %v1620_v0  ;;  %v2367_v31 = vpop.f32.mrb[40].mxu0  ;;  %v2429_v46 = vpop.f32.mrb[40].mxu1  ;;  %v3715_v61 = vmax.f32 %v3175_v38, %v3177_v39  ;;  %v3716_v39 = vmax.f32 %v3181_v41, %v3183_v42 }
 0x130   :  { %1771 = vst.msk [vmem:[%s3657_s3 + $0x8] sm:$0xff] %vm1769_vm4, %v1734_v52  ;;  %v1700_v25 = vadd.f32 %v3364_v15, %v1657_v24  ;;  %v1623_v28 = vmax.f32 %v2367_v31, %v2429_v46  ;;  %v1033_v40 = vpop.f32.mrb[41].mxu0  ;;  %v1423_v43 = vpop.f32.mrb[41].mxu1  ;;  %v3717_v26 = vmax.f32 %v3187_v44, %v3189_v45  ;;  %v3718_v45 = vmax.f32 %v3193_v47, %v3195_v48 }
 0x131   :  { %1770 = vst.msk [vmem:[%s3657_s3] sm:$0xff] %vm1769_vm4, %v1733_v49  ;;  %v1699_v29 = vadd.f32 %v3364_v15, %v1656_v27  ;;  %v1622_v30 = vmax.f32 %v1033_v40, %v1423_v43 }
 0x132   :  { %v1736_v32 = vmax.f32 %v1700_v25, 0.0  ;;  %v1659_v55 = vmax.f32 %v3714_v33, %v1623_v28 }
 0x133   :  { %v1735_v58 = vmax.f32 %v1699_v29, 0.0  ;;  %v1658_v0 = vmax.f32 %v3715_v61, %v1622_v30  ;;  %v2370_v18 = vpop.f32.mrb[42].mxu0  ;;  %v2432_v21 = vpop.f32.mrb[42].mxu1 }
 0x134   :  { %1773 = vst.msk [vmem:[%s3657_s3 + $0x18] sm:$0xff] %vm1769_vm4, %v1736_v32  ;;  %v1702_v34 = vadd.f32 %v3364_v15, %v1659_v55  ;;  %v1625_v37 = vmax.f32 %v2370_v18, %v2432_v21  ;;  %v1043_v52 = vpop.f32.mrb[43].mxu0  ;;  %v1433_v23 = vpop.f32.mrb[43].mxu1  ;;  %v3719_v32 = vmax.f32 %v3199_v50, %v3201_v51  ;;  %v3720_v51 = vmax.f32 %v3205_v53, %v3207_v54 }
 0x135   :  { %1772 = vst.msk [vmem:[%s3657_s3 + $0x10] sm:$0xff] %vm1769_vm4, %v1735_v58  ;;  %v1701_v35 = vadd.f32 %v3364_v15, %v1658_v0  ;;  %v1624_v36 = vmax.f32 %v1043_v52, %v1433_v23  ;;  %v3721_v52 = vmax.f32 %v3211_v56, %v3213_v57  ;;  %v3722_v57 = vmax.f32 %v3217_v59, %v3219_v60 }
 0x136   :  { %v1738_v38 = vmax.f32 %v1702_v34, 0.0  ;;  %v1661_v24 = vmax.f32 %v3716_v39, %v1625_v37 }
 0x137   :  { %v1737_v49 = vmax.f32 %v1701_v35, 0.0  ;;  %v1660_v27 = vmax.f32 %v3717_v26, %v1624_v36  ;;  %v2373_v31 = vpop.f32.mrb[44].mxu0  ;;  %v2435_v46 = vpop.f32.mrb[44].mxu1 }
 0x138   :  { %1775 = vst.msk [vmem:[%s3657_s3 + $0x28] sm:$0xff] %vm1769_vm4, %v1738_v38  ;;  %v1704_v25 = vadd.f32 %v3364_v15, %v1661_v24  ;;  %v1627_v28 = vmax.f32 %v2373_v31, %v2435_v46  ;;  %v1053_v40 = vpop.f32.mrb[45].mxu0  ;;  %v1443_v43 = vpop.f32.mrb[45].mxu1  ;;  %v3723_v31 = vmax.f32 %v3223_v62, %v3225_v63  ;;  %v3724_v63 = vmax.f32 %v3229_v1, %v3231_v2 }
 0x139   :  { %1774 = vst.msk [vmem:[%s3657_s3 + $0x20] sm:$0xff] %vm1769_vm4, %v1737_v49  ;;  %v1703_v41 = vadd.f32 %v3364_v15, %v1660_v27  ;;  %v1626_v42 = vmax.f32 %v1053_v40, %v1443_v43 }
 0x13a   :  { %v1740_v44 = vmax.f32 %v1704_v25, 0.0  ;;  %v1663_v29 = vmax.f32 %v3718_v45, %v1627_v28 }
 0x13b   :  { %v1739_v30 = vmax.f32 %v1703_v41, 0.0  ;;  %v1662_v33 = vmax.f32 %v3719_v32, %v1626_v42  ;;  %v2376_v55 = vpop.f32.mrb[46].mxu0  ;;  %v2438_v58 = vpop.f32.mrb[46].mxu1 }
 0x13c   :  { %1777 = vst.msk [vmem:[%s3657_s3 + $0x38] sm:$0xff] %vm1769_vm4, %v1740_v44  ;;  %v1706_v61 = vadd.f32 %v3364_v15, %v1663_v29  ;;  %v1629_v0 = vmax.f32 %v2376_v55, %v2438_v58  ;;  %v1063_v18 = vpop.f32.mrb[47].mxu0  ;;  %v1453_v21 = vpop.f32.mrb[47].mxu1  ;;  %v3725_v29 = vmax.f32 %v3235_v4, %v3237_v5  ;;  %v3726_v5 = vmax.f32 %v3241_v7, %v3243_v8 }
 0x13d   :  { %1776 = vst.msk [vmem:[%s3657_s3 + $0x30] sm:$0xff] %vm1769_vm4, %v1739_v30  ;;  %v1705_v47 = vadd.f32 %v3364_v15, %v1662_v33  ;;  %v1628_v48 = vmax.f32 %v1063_v18, %v1453_v21 }
 0x13e   :  { %v1742_v50 = vmax.f32 %v1706_v61, 0.0  ;;  %v1665_v34 = vmax.f32 %v3720_v51, %v1629_v0 }
 0x13f   :  { %v1741_v37 = vmax.f32 %v1705_v47, 0.0  ;;  %v1664_v23 = vmax.f32 %v3721_v52, %v1628_v48  ;;  %v2379_v35 = vpop.f32.mrb[48].mxu0  ;;  %v2441_v36 = vpop.f32.mrb[48].mxu1  ;;  %v3727_v47 = vmax.f32 %v3247_v10, %v3249_v11  ;;  %v3728_v11 = vmax.f32 %v3253_v13, %v3255_v14 }
 0x140   :  { %1779 = vst.msk [vmem:[%s3657_s3 + $0x48] sm:$0xff] %vm1769_vm4, %v1742_v50  ;;  %v1708_v38 = vadd.f32 %v3364_v15, %v1665_v34  ;;  %v1631_v39 = vmax.f32 %v2379_v35, %v2441_v36  ;;  %v1073_v24 = vpop.f32.mrb[49].mxu0  ;;  %v1463_v49 = vpop.f32.mrb[49].mxu1 }
 0x141   :  { %1778 = vst.msk [vmem:[%s3657_s3 + $0x40] sm:$0xff] %vm1769_vm4, %v1741_v37  ;;  %v1707_v53 = vadd.f32 %v3364_v15, %v1664_v23  ;;  %v1630_v54 = vmax.f32 %v1073_v24, %v1463_v49 }
 0x142   :  { %v1744_v56 = vmax.f32 %v1708_v38, 0.0  ;;  %v1667_v26 = vmax.f32 %v3722_v57, %v1631_v39  ;;  %v3729_v38 = vmax.f32 %v3259_v16, %v3261_v17  ;;  %v3730_v17 = vmax.f32 %v3265_v19, %v3267_v20 }
 0x143   :  { %v1743_v27 = vmax.f32 %v1707_v53, 0.0  ;;  %v1666_v46 = vmax.f32 %v3723_v31, %v1630_v54  ;;  %v2382_v25 = vpop.f32.mrb[50].mxu0  ;;  %v2444_v28 = vpop.f32.mrb[50].mxu1  ;;  %v3731_v31 = vmax.f32 %v3271_v22, %v3273_v12  ;;  %v3732_v22 = vmax.f32 %v3277_v9, %v3279_v6 }
 0x144   :  { %1781 = vst.msk [vmem:[%s3657_s3 + $0x58] sm:$0xff] %vm1769_vm4, %v1744_v56  ;;  %v1710_v40 = vadd.f32 %v3364_v15, %v1667_v26  ;;  %v1633_v43 = vmax.f32 %v2382_v25, %v2444_v28  ;;  %v1083_v41 = vpop.f32.mrb[51].mxu0  ;;  %v1473_v42 = vpop.f32.mrb[51].mxu1 }
 0x145   :  { %1780 = vst.msk [vmem:[%s3657_s3 + $0x50] sm:$0xff] %vm1769_vm4, %v1743_v27  ;;  %v1709_v59 = vadd.f32 %v3364_v15, %v1666_v46  ;;  %v1632_v60 = vmax.f32 %v1083_v41, %v1473_v42 }
 0x146   :  { %v1746_v62 = vmax.f32 %v1710_v40, 0.0  ;;  %v1669_v44 = vmax.f32 %v3724_v63, %v1633_v43 }
 0x147   :  { %v1745_v45 = vmax.f32 %v1709_v59, 0.0  ;;  %v1668_v30 = vmax.f32 %v3725_v29, %v1632_v60  ;;  %v2385_v32 = vpop.f32.mrb[52].mxu0  ;;  %v2447_v33 = vpop.f32.mrb[52].mxu1 }
 0x148   :  { %1783 = vst.msk [vmem:[%s3657_s3 + $0x68] sm:$0xff] %vm1769_vm4, %v1746_v62  ;;  %v1712_v55 = vadd.f32 %v3364_v15, %v1669_v44  ;;  %v1635_v58 = vmax.f32 %v2385_v32, %v2447_v33  ;;  %v1093_v61 = vpop.f32.mrb[53].mxu0  ;;  %v1483_v0 = vpop.f32.mrb[53].mxu1  ;;  %v3733_v62 = vld [vmem:[#allocation2_spill] sm:$0xff] }
 0x149   :  { %1782 = vst.msk [vmem:[%s3657_s3 + $0x60] sm:$0xff] %vm1769_vm4, %v1745_v45  ;;  %v1711_v1 = vadd.f32 %v3364_v15, %v1668_v30  ;;  %v1634_v2 = vmax.f32 %v1093_v61, %v1483_v0  ;;  %v3734_v63 = vmax.f32 %v3283_v3, %v3733_v62  ;;  %v3736_v61 = vld [vmem:[#allocation4_spill] sm:$0xff] }
 0x14a   :  { %v1748_v4 = vmax.f32 %v1712_v55, 0.0  ;;  %v1671_v18 = vmax.f32 %v3726_v5, %v1635_v58  ;;  %v3735_v58 = vld [vmem:[#allocation3_spill] sm:$0xff]  ;;  %v3739_v5 = vld [vmem:[#allocation6_spill] sm:$0xff] }
 0x14b   :  { %v1747_v21 = vmax.f32 %v1711_v1, 0.0  ;;  %v1670_v48 = vmax.f32 %v3727_v47, %v1634_v2  ;;  %v2388_v50 = vpop.f32.mrb[54].mxu0  ;;  %v2450_v51 = vpop.f32.mrb[54].mxu1  ;;  %v3737_v0 = vmax.f32 %v3735_v58, %v3736_v61 }
 0x14c   :  { %1785 = vst.msk [vmem:[%s3657_s3 + $0x78] sm:$0xff] %vm1769_vm4, %v1748_v4  ;;  %v1714_v34 = vadd.f32 %v3364_v15, %v1671_v18  ;;  %v1637_v37 = vmax.f32 %v2388_v50, %v2450_v51  ;;  %v1103_v52 = vpop.f32.mrb[55].mxu0  ;;  %v1493_v23 = vpop.f32.mrb[55].mxu1  ;;  %v3738_v4 = vld [vmem:[#allocation5_spill] sm:$0xff] }
 0x14d   :  { %1784 = vst.msk [vmem:[%s3657_s3 + $0x70] sm:$0xff] %vm1769_vm4, %v1747_v21  ;;  %v1713_v7 = vadd.f32 %v3364_v15, %v1670_v48  ;;  %v1636_v8 = vmax.f32 %v1103_v52, %v1493_v23  ;;  %v3740_v18 = vmax.f32 %v3738_v4, %v3739_v5 }
 0x14e   :  { %v1750_v10 = vmax.f32 %v1714_v34, 0.0  ;;  %v1673_v35 = vmax.f32 %v3728_v11, %v1637_v37 }
 0x14f   :  { %v1749_v36 = vmax.f32 %v1713_v7, 0.0  ;;  %v1672_v39 = vmax.f32 %v3729_v38, %v1636_v8  ;;  %v2391_v24 = vpop.f32.mrb[56].mxu0  ;;  %v2453_v49 = vpop.f32.mrb[56].mxu1  ;;  %v3741_v8 = vld [vmem:[#allocation7_spill] sm:$0xff]  ;;  %v3744_v38 = vld [vmem:[#allocation9_spill] sm:$0xff] }
 0x150   :  { %1787 = vst.msk [vmem:[%s3657_s3 + $0x88] sm:$0xff] %vm1769_vm4, %v1750_v10  ;;  %v1716_v53 = vadd.f32 %v3364_v15, %v1673_v35  ;;  %v1639_v54 = vmax.f32 %v2391_v24, %v2453_v49  ;;  %v1113_v56 = vpop.f32.mrb[57].mxu0  ;;  %v1503_v57 = vpop.f32.mrb[57].mxu1  ;;  %v3742_v10 = vld [vmem:[#allocation8_spill] sm:$0xff] }
 0x151   :  { %1786 = vst.msk [vmem:[%s3657_s3 + $0x80] sm:$0xff] %vm1769_vm4, %v1749_v36  ;;  %v1715_v13 = vadd.f32 %v3364_v15, %v1672_v39  ;;  %v1638_v14 = vmax.f32 %v1113_v56, %v1503_v57  ;;  %v3743_v11 = vmax.f32 %v3741_v8, %v3742_v10  ;;  %v3745_v39 = vld [vmem:[#allocation10_spill] sm:$0xff] }
 0x152   :  { %v1752_v16 = vmax.f32 %v1716_v53, 0.0  ;;  %v1675_v26 = vmax.f32 %v3730_v17, %v1639_v54  ;;  %v3746_v24 = vmax.f32 %v3744_v38, %v3745_v39 }
 0x153   :  { %v1751_v27 = vmax.f32 %v1715_v13, 0.0  ;;  %v1674_v46 = vmax.f32 %v3731_v31, %v1638_v14  ;;  %v2394_v25 = vpop.f32.mrb[58].mxu0  ;;  %v2456_v28 = vpop.f32.mrb[58].mxu1  ;;  %v3748_v31 = vld [vmem:[#allocation12_spill] sm:$0xff] }
 0x154   :  { %1789 = vst.msk [vmem:[%s3657_s3 + $0x98] sm:$0xff] %vm1769_vm4, %v1752_v16  ;;  %v1718_v40 = vadd.f32 %v3364_v15, %v1675_v26  ;;  %v1641_v43 = vmax.f32 %v2394_v25, %v2456_v28  ;;  %v1123_v41 = vpop.f32.mrb[59].mxu0  ;;  %v1513_v42 = vpop.f32.mrb[59].mxu1 }
 0x155   :  { %1788 = vst.msk [vmem:[%s3657_s3 + $0x90] sm:$0xff] %vm1769_vm4, %v1751_v27  ;;  %v1717_v12 = vadd.f32 %v3364_v15, %v1674_v46  ;;  %v1640_v19 = vmax.f32 %v1123_v41, %v1513_v42  ;;  %v3747_v27 = vld [vmem:[#allocation11_spill] sm:$0xff] }
 0x156   :  { %v1754_v20 = vmax.f32 %v1718_v40, 0.0  ;;  %v1677_v59 = vmax.f32 %v3732_v22, %v1641_v43  ;;  %v3749_v46 = vmax.f32 %v3747_v27, %v3748_v31  ;;  %v3750_v40 = vld [vmem:[#allocation13_spill] sm:$0xff]  ;;  %v3751_v43 = vld [vmem:[#allocation14_spill] sm:$0xff] }
 0x157   :  { %v1753_v60 = vmax.f32 %v1717_v12, 0.0  ;;  %v1676_v44 = vmax.f32 %v3734_v63, %v1640_v19  ;;  %v2397_v45 = vpop.f32.mrb[60].mxu0  ;;  %v2459_v29 = vpop.f32.mrb[60].mxu1  ;;  %v3752_v41 = vmax.f32 %v3750_v40, %v3751_v43 }
 0x158   :  { %1791 = vst.msk [vmem:[%s3657_s3 + $0xa8] sm:$0xff] %vm1769_vm4, %v1754_v20  ;;  %v1720_v30 = vadd.f32 %v3364_v15, %v1677_v59  ;;  %v1643_v32 = vmax.f32 %v2397_v45, %v2459_v29  ;;  %v1133_v33 = vpop.f32.mrb[61].mxu0  ;;  %v1523_v55 = vpop.f32.mrb[61].mxu1  ;;  %v3753_v45 = vld [vmem:[#allocation15_spill] sm:$0xff]  ;;  %v3754_v29 = vld [vmem:[#allocation16_spill] sm:$0xff] }
 0x159   :  { %1790 = vst.msk [vmem:[%s3657_s3 + $0xa0] sm:$0xff] %vm1769_vm4, %v1753_v60  ;;  %v1719_v3 = vadd.f32 %v3364_v15, %v1676_v44  ;;  %v1642_v6 = vmax.f32 %v1133_v33, %v1523_v55  ;;  %v3756_v55 = vld [vmem:[#allocation17_spill] sm:$0xff] }
 0x15a   :  { %v1756_v9 = vmax.f32 %v1720_v30, 0.0  ;;  %v1679_v1 = vmax.f32 %v3737_v0, %v1643_v32  ;;  %v3755_v30 = vmax.f32 %v3753_v45, %v3754_v29 }
 0x15b   :  { %v1755_v2 = vmax.f32 %v1719_v3, 0.0  ;;  %v1678_v21 = vmax.f32 %v3740_v18, %v1642_v6  ;;  %v2400_v47 = vpop.f32.mrb[62].mxu0  ;;  %v2462_v48 = vpop.f32.mrb[62].mxu1  ;;  %v3757_v3 = vld [vmem:[#allocation18_spill] sm:$0xff] }
 0x15c   :  { %1793 = vst.msk [vmem:[%s3657_s3 + $0xb8] sm:$0xff] %vm1769_vm4, %v1756_v9  ;;  %v1722_v50 = vadd.f32 %v3364_v15, %v1679_v1  ;;  %v1645_v51 = vmax.f32 %v2400_v47, %v2462_v48  ;;  %v1143_v34 = vpop.f32.mrb[63].mxu0  ;;  %v1533_v37 = vpop.f32.mrb[63].mxu1  ;;  %v3758_v6 = vmax.f32 %v3756_v55, %v3757_v3  ;;  %v3759_v47 = vld [vmem:[#allocation19_spill] sm:$0xff]  ;;  %v3760_v48 = vld [vmem:[#allocation20_spill] sm:$0xff] }
 0x15d   :  { %1792 = vst.msk [vmem:[%s3657_s3 + $0xb0] sm:$0xff] %vm1769_vm4, %v1755_v2  ;;  %v1721_v52 = vadd.f32 %v3364_v15, %v1678_v21  ;;  %v1644_v23 = vmax.f32 %v1143_v34, %v1533_v37  ;;  %v3762_v37 = vld [vmem:[#allocation21_spill] sm:$0xff] }
 0x15e   :  { %v1758_v7 = vmax.f32 %v1722_v50, 0.0  ;;  %v1681_v35 = vmax.f32 %v3743_v11, %v1645_v51  ;;  %v3761_v50 = vmax.f32 %v3759_v47, %v3760_v48 }
 0x15f   :  { %v1757_v36 = vmax.f32 %v1721_v52, 0.0  ;;  %v1680_v49 = vmax.f32 %v3746_v24, %v1644_v23  ;;  %v2403_v53 = vpop.f32.mrb[64].mxu0  ;;  %v2465_v54 = vpop.f32.mrb[64].mxu1  ;;  %v3763_v52 = vld [vmem:[#allocation22_spill] sm:$0xff] }
 0x160   :  { %1795 = vst.msk [vmem:[%s3657_s3 + $0xc8] sm:$0xff] %vm1769_vm4, %v1758_v7  ;;  %v1724_v56 = vadd.f32 %v3364_v15, %v1681_v35  ;;  %v1647_v57 = vmax.f32 %v2403_v53, %v2465_v54  ;;  %v1153_v13 = vpop.f32.mrb[65].mxu0  ;;  %v1543_v14 = vpop.f32.mrb[65].mxu1  ;;  %v3764_v23 = vmax.f32 %v3762_v37, %v3763_v52  ;;  %v3765_v53 = vld [vmem:[#allocation23_spill] sm:$0xff]  ;;  %v3766_v54 = vld [vmem:[#allocation24_spill] sm:$0xff] }
 0x161   :  { %1794 = vst.msk [vmem:[%s3657_s3 + $0xc0] sm:$0xff] %vm1769_vm4, %v1757_v36  ;;  %v1723_v16 = vadd.f32 %v3364_v15, %v1680_v49  ;;  %v1646_v17 = vmax.f32 %v1153_v13, %v1543_v14  ;;  %v3768_v14 = vld [vmem:[#allocation25_spill] sm:$0xff] }
 0x162   :  { %v1760_v26 = vmax.f32 %v1724_v56, 0.0  ;;  %v1683_v25 = vmax.f32 %v3749_v46, %v1647_v57  ;;  %v3767_v56 = vmax.f32 %v3765_v53, %v3766_v54 }
 0x163   :  { %v1759_v28 = vmax.f32 %v1723_v16, 0.0  ;;  %v1682_v42 = vmax.f32 %v3752_v41, %v1646_v17  ;;  %v2406_v12 = vpop.f32.mrb[66].mxu0  ;;  %v2468_v19 = vpop.f32.mrb[66].mxu1  ;;  %v3769_v16 = vld [vmem:[#allocation26_spill] sm:$0xff] }
 0x164   :  { %1797 = vst.msk [vmem:[%s3657_s3 + $0xd8] sm:$0xff] %vm1769_vm4, %v1760_v26  ;;  %v1726_v20 = vadd.f32 %v3364_v15, %v1683_v25  ;;  %v1649_v22 = vmax.f32 %v2406_v12, %v2468_v19  ;;  %v1163_v59 = vpop.f32.mrb[67].mxu0  ;;  %v1553_v60 = vpop.f32.mrb[67].mxu1  ;;  %v3770_v17 = vmax.f32 %v3768_v14, %v3769_v16 }
 0x165   :  { %1796 = vst.msk [vmem:[%s3657_s3 + $0xd0] sm:$0xff] %vm1769_vm4, %v1759_v28  ;;  %v1725_v62 = vadd.f32 %v3364_v15, %v1682_v42  ;;  %v1648_v63 = vmax.f32 %v1163_v59, %v1553_v60 }
 0x166   :  { %v1762_v44 = vmax.f32 %v1726_v20, 0.0  ;;  %v1685_v32 = vmax.f32 %v3755_v30, %v1649_v22 }
 0x167   :  { %v1761_v33 = vmax.f32 %v1725_v62, 0.0  ;;  %v1684_v9 = vmax.f32 %v3758_v6, %v1648_v63  ;;  %v2409_v58 = vpop.f32.mrb[68].mxu0  ;;  %v2471_v61 = vpop.f32.mrb[68].mxu1 }
 0x168   :  { %1799 = vst.msk [vmem:[%s3657_s3 + $0xe8] sm:$0xff] %vm1769_vm4, %v1762_v44  ;;  %v1728_v0 = vadd.f32 %v3364_v15, %v1685_v32  ;;  %v1651_v1 = vmax.f32 %v2409_v58, %v2471_v61  ;;  %v1173_v2 = vpop.f32.mrb[69].mxu0  ;;  %v1563_v4 = vpop.f32.mrb[69].mxu1 }
 0x169   :  { %1798 = vst.msk [vmem:[%s3657_s3 + $0xe0] sm:$0xff] %vm1769_vm4, %v1761_v33  ;;  %v1727_v5 = vadd.f32 %v3364_v15, %v1684_v9  ;;  %v1650_v18 = vmax.f32 %v1173_v2, %v1563_v4 }
 0x16a   :  { %v1764_v21 = vmax.f32 %v1728_v0, 0.0  ;;  %v1687_v51 = vmax.f32 %v3761_v50, %v1651_v1 }
 0x16b   :  { %v1763_v34 = vmax.f32 %v1727_v5, 0.0  ;;  %v1686_v7 = vmax.f32 %v3764_v23, %v1650_v18  ;;  %v2412_v8 = vpop.f32.mrb[70].mxu0  ;;  %v2474_v10 = vpop.f32.mrb[70].mxu1 }
 0x16c   :  { %1801 = vst.msk [vmem:[%s3657_s3 + $0xf8] sm:$0xff] %vm1769_vm4, %v1764_v21  ;;  %v1730_v11 = vadd.f32 %v3364_v15, %v1687_v51  ;;  %v1653_v35 = vmax.f32 %v2412_v8, %v2474_v10  ;;  %v1183_v36 = vpop.f32.mrb[71].mxu0  ;;  %v1573_v38 = vpop.f32.mrb[71].mxu1 }
 0x16d   :  { %1800 = vst.msk [vmem:[%s3657_s3 + $0xf0] sm:$0xff] %vm1769_vm4, %v1763_v34  ;;  %v1729_v39 = vadd.f32 %v3364_v15, %v1686_v7  ;;  %v1652_v24 = vmax.f32 %v1183_v36, %v1573_v38 }
 0x16e   :  { %v1766_v49 = vmax.f32 %v1730_v11, 0.0  ;;  %v1689_v57 = vmax.f32 %v3767_v56, %v1653_v35 }
 0x16f   :  { %v1765_v13 = vmax.f32 %v1729_v39, 0.0  ;;  %v1688_v26 = vmax.f32 %v3770_v17, %v1652_v24 }
 0x170   :  { %1803 = vst.msk [vmem:[%s3657_s3 + $0x108] sm:$0xff] %vm1769_vm4, %v1766_v49  ;;  %v1732_v27 = vadd.f32 %v3364_v15, %v1689_v57 }
 0x171   :  { %1802 = vst.msk [vmem:[%s3657_s3 + $0x100] sm:$0xff] %vm1769_vm4, %v1765_v13  ;;  %v1731_v31 = vadd.f32 %v3364_v15, %v1688_v26 }
 0x172   :  { %v1768_v46 = vmax.f32 %v1732_v27, 0.0 }
 0x173   :  { %v1767_v25 = vmax.f32 %v1731_v31, 0.0 }
 0x174   :  { %1805 = vst.msk [vmem:[%s3657_s3 + $0x118] sm:$0xff] %vm1769_vm4, %v1768_v46 }
 0x175   :  { %1804 = vst.msk [vmem:[%s3657_s3 + $0x110] sm:$0xff] %vm1769_vm4, %v1767_v25 }

// kernel: cnn_mnist_forward.5
= control target key start
LH: loop header
LB: loop body
LE: loop exit
PB: predicated region body
PF: predicated region fallthrough
CT: control target
= control target key end

     0   :  { %v462_v3 = vmov 0.0|0.0   ;;  %vm463_vm0 = vmmov 0   ;;  %v464_v4 = vmov 0.0   ;;  %vm70_vm1 = vcmask 523264   ;;  %s666_s1 = inlined_call_operand.vmem [shape: f32[320,50], index: 1, kind: input, shape index: {}]   ;;  %s667_s0 = inlined_call_operand.vmem [shape: f32[8,320], index: 0, kind: input, shape index: {}]   ;;  %s668_s3 = inlined_call_operand.vmem [shape: f32[50,10], index: 3, kind: input, shape index: {}]   ;;  %s669_s2 = inlined_call_operand.vmem [shape: f32[1,50], index: 2, kind: input, shape index: {}]   ;;  %s670_s4 = inlined_call_operand.vmem [shape: f32[1,10], index: 4, kind: input, shape index: {}]   ;;  %s671_s5 = inlined_call_operand.vmem [shape: f32[8,10], index: 5, kind: output, shape index: {}]  }
   0x1   :  { %v39_v0 = vld [vmem:[%s666_s1 + $0x80] sm:$0xff]  ;;  %v40_v1 = vld [vmem:[%s666_s1 + $0x88] sm:$0xff]  ;;  %438 = vmatprep.subr.bf16.mxu1 %v462_v3  ;;  %386 = vmatprep.mubr.msk.f32.mxu1 %vm463_vm0, %v464_v4  ;;  %v41_v7 = vld [vmem:[%s666_s1 + $0x90] sm:$0xff]  ;;  %vm233_vm2 = vcmask 1041408   ;;  %vm229_vm3 = vcmask 408576   ;;  %vm307_vm4 = vcmask 80896  }
   0x2   :  { %v23_v2 = vld [vmem:[%s666_s1] sm:$0xff]  ;;  %v406_v5 = vpack.c.bf16 %v40_v1, %v39_v0  ;;  %v24_v6 = vld [vmem:[%s666_s1 + $0x8] sm:$0xff]  ;;  %v42_v8 = vld [vmem:[%s666_s1 + $0x98] sm:$0xff] }
   0x3   :  { %v408_v9 = vpack.c.bf16 %v24_v6, %v23_v2  ;;  %v410_v10 = vpack.c.bf16 %v42_v8, %v41_v7  ;;  %v25_v11 = vld [vmem:[%s666_s1 + $0x10] sm:$0xff]  ;;  %v26_v12 = vld [vmem:[%s666_s1 + $0x18] sm:$0xff]  ;;  %v43_v13 = vld [vmem:[%s666_s1 + $0xa0] sm:$0xff] }
   0x4   :  { %407 = vmatprep.subr.bf16.mxu0 %v406_v5  ;;  %v44_v14 = vld [vmem:[%s666_s1 + $0xa8] sm:$0xff]  ;;  %v412_v15 = vpack.c.bf16 %v26_v12, %v25_v11  ;;  %v27_v17 = vld [vmem:[%s666_s1 + $0x20] sm:$0xff]  ;;  %v45_v19 = vld [vmem:[%s666_s1 + $0xb0] sm:$0xff] }
   0x5   :  { %409 = vmatpush3.bf16.msra.mxu0 %v408_v9  ;;  %v414_v16 = vpack.c.bf16 %v44_v14, %v43_v13  ;;  %v28_v18 = vld [vmem:[%s666_s1 + $0x28] sm:$0xff]  ;;  %v46_v20 = vld [vmem:[%s666_s1 + $0xb8] sm:$0xff]  ;;  %v55_v22 = vld [vmem:[%s666_s1 + $0x100] sm:$0xff] }
   0x6   :  { %411 = vmatprep.subr.bf16.mxu0 %v410_v10  ;;  %v416_v21 = vpack.c.bf16 %v28_v18, %v27_v17  ;;  %v56_v23 = vld [vmem:[%s666_s1 + $0x108] sm:$0xff]  ;;  %v418_v24 = vpack.c.bf16 %v46_v20, %v45_v19  ;;  %v29_v25 = vld [vmem:[%s666_s1 + $0x30] sm:$0xff]  ;;  %v30_v26 = vld [vmem:[%s666_s1 + $0x38] sm:$0xff] }
   0x7   :  { %v47_v27 = vld [vmem:[%s666_s1 + $0xc0] sm:$0xff]  ;;  %v439_v28 = vpack.c.bf16 %v56_v23, %v55_v22  ;;  %v48_v29 = vld [vmem:[%s666_s1 + $0xc8] sm:$0xff]  ;;  %v57_v30 = vld [vmem:[%s666_s1 + $0x110] sm:$0xff]  ;;  %v420_v33 = vpack.c.bf16 %v30_v26, %v29_v25 }
   0x8   :  { %v58_v31 = vld [vmem:[%s666_s1 + $0x118] sm:$0xff]  ;;  %v59_v34 = vld [vmem:[%s666_s1 + $0x120] sm:$0xff]  ;;  %v60_v35 = vld [vmem:[%s666_s1 + $0x128] sm:$0xff]  ;;  %v422_v37 = vpack.c.bf16 %v48_v29, %v47_v27 }
   0x9   :  { %413 = vmatpush3.bf16.msra.mxu0 %v412_v15  ;;  %440 = vmatpush3.bf16.msra.mxu1 %v439_v28  ;;  %v442_v32 = vpack.c.bf16 %v58_v31, %v57_v30  ;;  %v21_v36 = vld [vmem:[%s667_s0 + $0x8] sm:$0xff]  ;;  %v31_v38 = vld [vmem:[%s666_s1 + $0x40] sm:$0xff]  ;;  %v49_v40 = vld [vmem:[%s666_s1 + $0xd0] sm:$0xff]  ;;  %v445_v42 = vpack.c.bf16 %v60_v35, %v59_v34 }
   0xa   :  { %415 = vmatprep.subr.bf16.mxu0 %v414_v16  ;;  %441 = vmatprep.subr.bf16.mxu1 %v462_v3  ;;  %v32_v39 = vld [vmem:[%s666_s1 + $0x48] sm:$0xff]  ;;  %v50_v41 = vld [vmem:[%s666_s1 + $0xd8] sm:$0xff]  ;;  %v61_v44 = vld [vmem:[%s666_s1 + $0x130] sm:$0xff] }
   0xb   :  { %138 = vmatprep.mubr.f32.mxu0 %v21_v36  ;;  %v424_v43 = vpack.c.bf16 %v32_v39, %v31_v38  ;;  %v62_v45 = vld [vmem:[%s666_s1 + $0x138] sm:$0xff]  ;;  %v426_v46 = vpack.c.bf16 %v50_v41, %v49_v40  ;;  %v33_v47 = vld [vmem:[%s666_s1 + $0x50] sm:$0xff]  ;;  %v51_v49 = vld [vmem:[%s666_s1 + $0xe0] sm:$0xff] }
   0xc   :  { %v34_v48 = vld [vmem:[%s666_s1 + $0x58] sm:$0xff]  ;;  %v52_v50 = vld [vmem:[%s666_s1 + $0xe8] sm:$0xff]  ;;  %v448_v51 = vpack.c.bf16 %v62_v45, %v61_v44  ;;  %v215_v53 = vld [vmem:[%s668_s3] sm:$0xff] }
   0xd   :  { %417 = vmatpush3.bf16.msra.mxu0 %v416_v21  ;;  %443 = vmatpush3.bf16.msra.mxu1 %v442_v32  ;;  %v428_v52 = vpack.c.bf16 %v34_v48, %v33_v47  ;;  %v216_v54 = vld [vmem:[%s668_s3 + $0x8] sm:$0xff]  ;;  %v430_v55 = vpack.c.bf16 %v52_v50, %v51_v49  ;;  %v35_v56 = vld [vmem:[%s666_s1 + $0x60] sm:$0xff]  ;;  %v53_v58 = vld [vmem:[%s666_s1 + $0xf0] sm:$0xff] }
   0xe   :  { %419 = vmatprep.subr.bf16.mxu0 %v418_v24  ;;  %444 = vmatprep.subr.bf16.mxu1 %v462_v3  ;;  %v36_v57 = vld [vmem:[%s666_s1 + $0x68] sm:$0xff]  ;;  %v54_v59 = vld [vmem:[%s666_s1 + $0xf8] sm:$0xff]  ;;  %v22_v60 = vld [vmem:[%s667_s0 + $0x10] sm:$0xff]  ;;  %v451_v61 = vpack.c.bf16 %v216_v54, %v215_v53 }
   0xf   :  { %v432_v62 = vpack.c.bf16 %v36_v57, %v35_v56  ;;  %v434_v63 = vpack.c.bf16 %v54_v59, %v53_v58  ;;  %v37_v0 = vld [vmem:[%s666_s1 + $0x70] sm:$0xff]  ;;  %v38_v1 = vld [vmem:[%s666_s1 + $0x78] sm:$0xff]  ;;  %v20_v5 = vld [vmem:[%s667_s0] sm:$0xff] }
  0x10   :  { %v436_v2 = vpack.c.bf16 %v38_v1, %v37_v0  ;;  %v217_v6 = vld [vmem:[%s668_s3 + $0x10] sm:$0xff]  ;;  %v218_v7 = vld [vmem:[%s668_s3 + $0x18] sm:$0xff]  ;;  %v219_v9 = vld [vmem:[%s668_s3 + $0x20] sm:$0xff] }
  0x11   :  { %421 = vmatpush3.bf16.msra.mxu0 %v420_v33  ;;  %446 = vmatpush3.bf16.msra.mxu1 %v445_v42  ;;  %v454_v8 = vpack.c.bf16 %v218_v7, %v217_v6  ;;  %v220_v10 = vld [vmem:[%s668_s3 + $0x28] sm:$0xff]  ;;  %v221_v12 = vld [vmem:[%s668_s3 + $0x30] sm:$0x3]  ;;  %v313_v16 = vld [vmem:[%s669_s2] ss:$0 sm:$0xff] }
  0x12   :  { %423 = vmatprep.subr.bf16.mxu0 %v422_v37  ;;  %447 = vmatprep.subr.bf16.mxu1 %v462_v3  ;;  %v457_v11 = vpack.c.bf16 %v220_v10, %v219_v9 }
  0x15   :  { %425 = vmatpush3.bf16.msra.mxu0 %v424_v43  ;;  %449 = vmatpush3.bf16.msra.mxu1 %v448_v51 }
  0x16   :  { %427 = vmatprep.subr.bf16.mxu0 %v426_v46  ;;  %450 = vmatprep.subr.bf16.mxu1 %v462_v3 }
  0x18   :  { %387 = vmatmul.mubr.msk.f32.vlgmr.msra.gmra.mrb[0].mxu1 %vm70_vm1, %v22_v60 }
  0x19   :  { %429 = vmatpush3.bf16.msra.mxu0 %v428_v52  ;;  %452 = vmatpush3.bf16.msra.mxu1 %v451_v61 }
  0x1a   :  { %431 = vmatprep.subr.bf16.mxu0 %v430_v55  ;;  %403 = vmatprep.mubr.msk.f32.mxu1 %vm463_vm0, %v464_v4 }
  0x1b   :  { %453 = vmatprep.subr.bf16.mxu1 %v462_v3 }
  0x1d   :  { %433 = vmatpush3.bf16.msra.mxu0 %v432_v62  ;;  %455 = vmatpush3.bf16.msra.mxu1 %v454_v8 }
  0x1e   :  { %435 = vmatprep.subr.bf16.mxu0 %v434_v63  ;;  %456 = vmatprep.subr.bf16.mxu1 %v462_v3 }
  0x21   :  { %437 = vmatpush3.bf16.msra.mxu0 %v436_v2  ;;  %458 = vmatpush3.bf16.msra.mxu1 %v457_v11 }
  0x22   :  { %401 = vmatprep.subr.mxu1 %v464_v4  ;;  %v315_v4 = vld [vmem:[%s670_s4] ss:$0 sm:$0xff] }
  0x24   :  { %139 = vmatmul.mubr.f32.vlgmr.msra.gmra.mrb[0].mxu0 %v20_v5 }
  0x25   :  { %402 = vmatpush3.msk.msra.mxu1 %vm233_vm2, %v221_v12 }
  0xeb   :  { %v210_v13 = vpop.f32.mrb[0].mxu1 }
  0xec   :  { %v388_v3 = vpop.f32.mrb[1].mxu1 }
  0xf7   :  { %v350_v14 = vpop.f32.mrb[0].mxu0 }
  0xf8   :  { %v351_v15 = vpop.f32.mrb[1].mxu0 }
  0xf9   :  { %v352_v17 = vadd.f32 %v351_v15, %v350_v14 }
  0xfb   :  { %v141_v18 = vadd.f32 %v352_v17, %v313_v16 }
  0xfd   :  { %v211_v19 = vadd.f32 %v210_v13, %v141_v18 }
  0xff   :  { %v214_v20 = vmax.f32 %v211_v19, 0.0 }
 0x101   :  { %404 = vmatmul.mubr.msk.f32.vlgmr.msra.gmra.mrb[2].mxu1 %vm229_vm3, %v214_v20 }
 0x1d4   :  { %v303_v21 = vpop.f32.mrb[2].mxu1 }
 0x1d5   :  { %v304_v22 = vadd.f32 %v315_v4, %v303_v21  ;;  %v405_v23 = vpop.f32.mrb[3].mxu1 }
 0x1d7   :  { %308 = vst.msk [vmem:[%s671_s5] sm:$0xff] %vm307_vm4, %v304_v22 }

// kernel: cnn_mnist_forward.4
= control target key start
LH: loop header
LB: loop body
LE: loop exit
PB: predicated region body
PF: predicated region fallthrough
CT: control target
= control target key end

     0   :  { %vm54_vm0 = vcmask 998400   ;;  %vm67_vm1 = vcmask 1041408   ;;  %vm864_vm2 = vmmov 1   ;;  %vm501_vm4 = vcmask 162816   ;;  %s1220_s1 = inlined_call_operand.vmem [shape: f32[250,20], index: 1, kind: input, shape index: {}]   ;;  %s1221_s0 = inlined_call_operand.vmem [shape: f32[4,32,250], index: 0, kind: input, shape index: {}]   ;;  %s1222_s2 = inlined_call_operand.vmem [shape: f32[1,20], index: 2, kind: input, shape index: {}]   ;;  %s1223_s3 = inlined_call_operand.vmem [shape: f32[32,20], index: 3, kind: output, shape index: {}]  }
   0x1   :  { %v30_v0 = vld [vmem:[%s1220_s1 + $0x80] sm:$0xff]  ;;  %v31_v1 = vld [vmem:[%s1220_s1 + $0x88] sm:$0xff]  ;;  %v32_v5 = vld [vmem:[%s1220_s1 + $0x90] sm:$0xff] }
   0x2   :  { %v14_v2 = vld [vmem:[%s1220_s1] sm:$0xff]  ;;  %v894_v3 = vpack.c.bf16 %v31_v1, %v30_v0  ;;  %v15_v4 = vld [vmem:[%s1220_s1 + $0x8] sm:$0xff]  ;;  %v33_v6 = vld [vmem:[%s1220_s1 + $0x98] sm:$0xff] }
   0x3   :  { %v905_v7 = vpack.c.bf16 %v15_v4, %v14_v2  ;;  %v907_v8 = vpack.c.bf16 %v33_v6, %v32_v5  ;;  %v16_v9 = vld [vmem:[%s1220_s1 + $0x10] sm:$0xff]  ;;  %v17_v10 = vld [vmem:[%s1220_s1 + $0x18] sm:$0xff]  ;;  %v34_v11 = vld [vmem:[%s1220_s1 + $0xa0] sm:$0xff] }
   0x4   :  { %732 = vmatprep.subr.bf16.mxu0 %v894_v3  ;;  %765 = vmatprep.subr.bf16.mxu1 %v894_v3  ;;  %v35_v12 = vld [vmem:[%s1220_s1 + $0xa8] sm:$0xff]  ;;  %v925_v13 = vpack.c.bf16 %v17_v10, %v16_v9  ;;  %v18_v15 = vld [vmem:[%s1220_s1 + $0x20] sm:$0xff]  ;;  %v36_v17 = vld [vmem:[%s1220_s1 + $0xb0] sm:$0xff] }
   0x5   :  { %734 = vmatpush3.bf16.msra.mxu0 %v905_v7  ;;  %767 = vmatpush3.bf16.msra.mxu1 %v905_v7  ;;  %v929_v14 = vpack.c.bf16 %v35_v12, %v34_v11  ;;  %v19_v16 = vld [vmem:[%s1220_s1 + $0x28] sm:$0xff]  ;;  %v37_v18 = vld [vmem:[%s1220_s1 + $0xb8] sm:$0xff]  ;;  %v20_v21 = vld [vmem:[%s1220_s1 + $0x30] sm:$0xff] }
   0x6   :  { %736 = vmatprep.subr.bf16.mxu0 %v907_v8  ;;  %769 = vmatprep.subr.bf16.mxu1 %v907_v8  ;;  %v945_v19 = vpack.c.bf16 %v19_v16, %v18_v15  ;;  %v949_v20 = vpack.c.bf16 %v37_v18, %v36_v17  ;;  %v21_v22 = vld [vmem:[%s1220_s1 + $0x38] sm:$0xff]  ;;  %v38_v23 = vld [vmem:[%s1220_s1 + $0xc0] sm:$0xff]  ;;  %v39_v24 = vld [vmem:[%s1220_s1 + $0xc8] sm:$0xff] }
   0x7   :  { %v47_v25 = vld [vmem:[%s1221_s0 + $0x8] sm:$0xff]  ;;  %v971_v27 = vpack.c.bf16 %v21_v22, %v20_v21  ;;  %v975_v28 = vpack.c.bf16 %v39_v24, %v38_v23  ;;  %v22_v29 = vld [vmem:[%s1220_s1 + $0x40] sm:$0xff]  ;;  %v40_v31 = vld [vmem:[%s1220_s1 + $0xd0] sm:$0xff] }
   0x8   :  { %v516_v26 = vld [vmem:[%s1221_s0 + $0x48] sm:$0xff]  ;;  %v41_v32 = vld [vmem:[%s1220_s1 + $0xd8] sm:$0xff]  ;;  %511 = vmatprep.mubr.msk.f32.mxu0 %vm54_vm0, %v47_v25  ;;  %v24_v35 = vld [vmem:[%s1220_s1 + $0x50] sm:$0xff] }
   0x9   :  { %738 = vmatpush3.bf16.msra.mxu0 %v925_v13  ;;  %771 = vmatpush3.bf16.msra.mxu1 %v925_v13  ;;  %v23_v30 = vld [vmem:[%s1220_s1 + $0x48] sm:$0xff]  ;;  %v997_v34 = vpack.c.bf16 %v41_v32, %v40_v31  ;;  %v25_v36 = vld [vmem:[%s1220_s1 + $0x58] sm:$0xff]  ;;  %v42_v37 = vld [vmem:[%s1220_s1 + $0xe0] sm:$0xff] }
   0xa   :  { %740 = vmatprep.subr.bf16.mxu0 %v929_v14  ;;  %773 = vmatprep.subr.bf16.mxu1 %v929_v14  ;;  %v993_v33 = vpack.c.bf16 %v23_v30, %v22_v29  ;;  %v43_v38 = vld [vmem:[%s1220_s1 + $0xe8] sm:$0xff]  ;;  %v1013_v39 = vpack.c.bf16 %v25_v36, %v24_v35  ;;  %v26_v41 = vld [vmem:[%s1220_s1 + $0x60] sm:$0xff]  ;;  %v44_v43 = vld [vmem:[%s1220_s1 + $0xf0] sm:$0xff] }
   0xb   :  { %524 = vmatprep.mubr.msk.f32.mxu1 %vm54_vm0, %v516_v26  ;;  %v1017_v40 = vpack.c.bf16 %v43_v38, %v42_v37  ;;  %v27_v42 = vld [vmem:[%s1220_s1 + $0x68] sm:$0xff]  ;;  %v45_v44 = vld [vmem:[%s1220_s1 + $0xf8] sm:$0x3]  ;;  %v28_v47 = vld [vmem:[%s1220_s1 + $0x70] sm:$0xff] }
   0xc   :  { %v1033_v45 = vpack.c.bf16 %v27_v42, %v26_v41  ;;  %v1037_v46 = vpack.c.bf16 %v45_v44, %v44_v43  ;;  %v29_v48 = vld [vmem:[%s1220_s1 + $0x78] sm:$0xff]  ;;  %vm1045_vm3 = vmpackc.low %vm67_vm1, %vm864_vm2  ;;  %v46_v51 = vld [vmem:[%s1221_s0] sm:$0xff] }
   0xd   :  { %742 = vmatpush3.bf16.msra.mxu0 %v945_v19  ;;  %775 = vmatpush3.bf16.msra.mxu1 %v945_v19  ;;  %v1051_v50 = vpack.c.bf16 %v29_v48, %v28_v47  ;;  %v515_v52 = vld [vmem:[%s1221_s0 + $0x40] sm:$0xff]  ;;  %v49_v53 = vld [vmem:[%s1221_s0 + $0x18] sm:$0xff]  ;;  %v48_v55 = vld [vmem:[%s1221_s0 + $0x10] sm:$0xff] }
   0xe   :  { %744 = vmatprep.subr.bf16.mxu0 %v949_v20  ;;  %777 = vmatprep.subr.bf16.mxu1 %v949_v20  ;;  %v518_v54 = vld [vmem:[%s1221_s0 + $0x58] sm:$0xff]  ;;  %v517_v56 = vld [vmem:[%s1221_s0 + $0x50] sm:$0xff]  ;;  %v51_v57 = vld [vmem:[%s1221_s0 + $0x28] sm:$0xff] }
   0xf   :  { %v520_v58 = vld [vmem:[%s1221_s0 + $0x68] sm:$0xff]  ;;  %v50_v59 = vld [vmem:[%s1221_s0 + $0x20] sm:$0xff]  ;;  %v53_v61 = vld [vmem:[%s1221_s0 + $0x38] sm:$0xff] }
  0x10   :  { %v519_v60 = vld [vmem:[%s1221_s0 + $0x60] sm:$0xff]  ;;  %v522_v62 = vld [vmem:[%s1221_s0 + $0x78] sm:$0xff]  ;;  %v52_v63 = vld [vmem:[%s1221_s0 + $0x30] sm:$0xff] }
  0x11   :  { %746 = vmatpush3.bf16.msra.mxu0 %v971_v27  ;;  %779 = vmatpush3.bf16.msra.mxu1 %v971_v27  ;;  %v521_v0 = vld [vmem:[%s1221_s0 + $0x70] sm:$0xff]  ;;  %v529_v1 = vld [vmem:[%s1221_s0 + $0x88] sm:$0xff]  ;;  %v541_v4 = vld [vmem:[%s1221_s0 + $0xc0] sm:$0xff] }
  0x12   :  { %748 = vmatprep.subr.bf16.mxu0 %v975_v28  ;;  %781 = vmatprep.subr.bf16.mxu1 %v975_v28  ;;  %v542_v2 = vld [vmem:[%s1221_s0 + $0xc8] sm:$0xff]  ;;  %v531_v5 = vld [vmem:[%s1221_s0 + $0x98] sm:$0xff]  ;;  %v532_v11 = vld [vmem:[%s1221_s0 + $0xa0] sm:$0xff] }
  0x13   :  { %v544_v6 = vld [vmem:[%s1221_s0 + $0xd8] sm:$0xff]  ;;  %v533_v9 = vld [vmem:[%s1221_s0 + $0xa8] sm:$0xff]  ;;  %v545_v12 = vld [vmem:[%s1221_s0 + $0xe0] sm:$0xff] }
  0x14   :  { %v546_v10 = vld [vmem:[%s1221_s0 + $0xe8] sm:$0xff]  ;;  %v534_v15 = vld [vmem:[%s1221_s0 + $0xb0] sm:$0xff] }
  0x15   :  { %750 = vmatpush3.bf16.msra.mxu0 %v993_v33  ;;  %783 = vmatpush3.bf16.msra.mxu1 %v993_v33  ;;  %v547_v16 = vld [vmem:[%s1221_s0 + $0xf0] sm:$0xff] }
  0x16   :  { %752 = vmatprep.subr.bf16.mxu0 %v997_v34  ;;  %785 = vmatprep.subr.bf16.mxu1 %v997_v34 }
  0x19   :  { %754 = vmatpush3.bf16.msra.mxu0 %v1013_v39  ;;  %787 = vmatpush3.bf16.msra.mxu1 %v1013_v39 }
  0x1a   :  { %756 = vmatprep.subr.bf16.mxu0 %v1017_v40  ;;  %789 = vmatprep.subr.bf16.mxu1 %v1017_v40 }
  0x1d   :  { %758 = vmatpush3.bf16.msra.mxu0 %v1033_v45  ;;  %791 = vmatpush3.bf16.msra.mxu1 %v1033_v45 }
  0x1e   :  { %761 = vmatprep.subr.msk.bf16.mxu0 %vm1045_vm3, %v1037_v46  ;;  %794 = vmatprep.subr.msk.bf16.mxu1 %vm1045_vm3, %v1037_v46 }
  0x21   :  { %763 = vmatpush3.bf16.msra.mxu0 %v1051_v50  ;;  %796 = vmatpush3.bf16.msra.mxu1 %v1051_v50 }
  0x22   :  { %798 = vmatprep.subr.bf16.mxu0 %v894_v3  ;;  %831 = vmatprep.subr.bf16.mxu1 %v894_v3  ;;  %v528_v3 = vld [vmem:[%s1221_s0 + $0x80] sm:$0xff] }
  0x24   :  { %136 = vmatmul.mubr.f32.vlgmr.msra.gmra.mrb[0].mxu0 %v46_v51  ;;  %242 = vmatmul.mubr.f32.vlgmr.msra.gmra.mrb[0].mxu1 %v515_v52 }
  0x25   :  { %800 = vmatpush3.bf16.msra.mxu0 %v905_v7  ;;  %833 = vmatpush3.bf16.msra.mxu1 %v905_v7  ;;  %v530_v7 = vld [vmem:[%s1221_s0 + $0x90] sm:$0xff] }
  0x26   :  { %802 = vmatprep.subr.bf16.mxu0 %v907_v8  ;;  %835 = vmatprep.subr.bf16.mxu1 %v907_v8  ;;  %v543_v8 = vld [vmem:[%s1221_s0 + $0xd0] sm:$0xff] }
  0x27   :  { %512 = vmatprep.mubr.msk.f32.mxu0 %vm54_vm0, %v49_v53  ;;  %525 = vmatprep.mubr.msk.f32.mxu1 %vm54_vm0, %v518_v54  ;;  %v554_v54 = vld [vmem:[%s1222_s2] ss:$0 sm:$0xff] }
  0x28   :  { %141 = vmatmul.mubr.f32.gmra.mrb[2].mxu0 %v48_v55  ;;  %247 = vmatmul.mubr.f32.gmra.mrb[2].mxu1 %v517_v56 }
  0x29   :  { %804 = vmatpush3.bf16.msra.mxu0 %v925_v13  ;;  %837 = vmatpush3.bf16.msra.mxu1 %v925_v13  ;;  %v535_v13 = vld [vmem:[%s1221_s0 + $0xb8] sm:$0xff] }
  0x2a   :  { %806 = vmatprep.subr.bf16.mxu0 %v929_v14  ;;  %839 = vmatprep.subr.bf16.mxu1 %v929_v14  ;;  %v548_v14 = vld [vmem:[%s1221_s0 + $0xf8] sm:$0xff] }
  0x2b   :  { %513 = vmatprep.mubr.msk.f32.mxu0 %vm54_vm0, %v51_v57  ;;  %526 = vmatprep.mubr.msk.f32.mxu1 %vm54_vm0, %v520_v58 }
  0x2c   :  { %146 = vmatmul.mubr.f32.gmra.mrb[4].mxu0 %v50_v59  ;;  %252 = vmatmul.mubr.f32.gmra.mrb[4].mxu1 %v519_v60 }
  0x2d   :  { %808 = vmatpush3.bf16.msra.mxu0 %v945_v19  ;;  %841 = vmatpush3.bf16.msra.mxu1 %v945_v19 }
  0x2e   :  { %810 = vmatprep.subr.bf16.mxu0 %v949_v20  ;;  %843 = vmatprep.subr.bf16.mxu1 %v949_v20 }
  0x2f   :  { %514 = vmatprep.mubr.msk.f32.mxu0 %vm54_vm0, %v53_v61  ;;  %527 = vmatprep.mubr.msk.f32.mxu1 %vm54_vm0, %v522_v62 }
  0x30   :  { %151 = vmatmul.mubr.f32.gmra.mrb[6].mxu0 %v52_v63  ;;  %257 = vmatmul.mubr.f32.gmra.mrb[6].mxu1 %v521_v0 }
  0x31   :  { %812 = vmatpush3.bf16.msra.mxu0 %v971_v27  ;;  %845 = vmatpush3.bf16.msra.mxu1 %v971_v27 }
  0x32   :  { %814 = vmatprep.subr.bf16.mxu0 %v975_v28  ;;  %847 = vmatprep.subr.bf16.mxu1 %v975_v28 }
  0x33   :  { %537 = vmatprep.mubr.msk.f32.mxu0 %vm54_vm0, %v529_v1  ;;  %550 = vmatprep.mubr.msk.f32.mxu1 %vm54_vm0, %v542_v2 }
  0x35   :  { %816 = vmatpush3.bf16.msra.mxu0 %v993_v33  ;;  %849 = vmatpush3.bf16.msra.mxu1 %v993_v33 }
  0x36   :  { %818 = vmatprep.subr.bf16.mxu0 %v997_v34  ;;  %851 = vmatprep.subr.bf16.mxu1 %v997_v34 }
  0x39   :  { %820 = vmatpush3.bf16.msra.mxu0 %v1013_v39  ;;  %853 = vmatpush3.bf16.msra.mxu1 %v1013_v39 }
  0x3a   :  { %822 = vmatprep.subr.bf16.mxu0 %v1017_v40  ;;  %855 = vmatprep.subr.bf16.mxu1 %v1017_v40 }
  0x3d   :  { %824 = vmatpush3.bf16.msra.mxu0 %v1033_v45  ;;  %857 = vmatpush3.bf16.msra.mxu1 %v1033_v45 }
  0x3e   :  { %827 = vmatprep.subr.msk.bf16.mxu0 %vm1045_vm3, %v1037_v46  ;;  %860 = vmatprep.subr.msk.bf16.mxu1 %vm1045_vm3, %v1037_v46 }
  0x41   :  { %829 = vmatpush3.bf16.msra.mxu0 %v1051_v50  ;;  %862 = vmatpush3.bf16.msra.mxu1 %v1051_v50 }
  0x44   :  { %348 = vmatmul.mubr.f32.vlgmr.msra.gmra.mrb[8].mxu0 %v528_v3  ;;  %454 = vmatmul.mubr.f32.vlgmr.msra.gmra.mrb[8].mxu1 %v541_v4 }
  0x45   :  { %538 = vmatprep.mubr.msk.f32.mxu0 %vm54_vm0, %v531_v5  ;;  %551 = vmatprep.mubr.msk.f32.mxu1 %vm54_vm0, %v544_v6 }
  0x48   :  { %353 = vmatmul.mubr.f32.gmra.mrb[10].mxu0 %v530_v7  ;;  %459 = vmatmul.mubr.f32.gmra.mrb[10].mxu1 %v543_v8 }
  0x49   :  { %539 = vmatprep.mubr.msk.f32.mxu0 %vm54_vm0, %v533_v9  ;;  %552 = vmatprep.mubr.msk.f32.mxu1 %vm54_vm0, %v546_v10 }
  0x4c   :  { %358 = vmatmul.mubr.f32.gmra.mrb[12].mxu0 %v532_v11  ;;  %464 = vmatmul.mubr.f32.gmra.mrb[12].mxu1 %v545_v12 }
  0x4d   :  { %540 = vmatprep.mubr.msk.f32.mxu0 %vm54_vm0, %v535_v13  ;;  %553 = vmatprep.mubr.msk.f32.mxu1 %vm54_vm0, %v548_v14 }
  0x50   :  { %363 = vmatmul.mubr.f32.gmra.mrb[14].mxu0 %v534_v15  ;;  %469 = vmatmul.mubr.f32.gmra.mrb[14].mxu1 %v547_v16 }
  0xf7   :  { %v587_v17 = vpop.f32.mrb[0].mxu0  ;;  %v631_v18 = vpop.f32.mrb[0].mxu1 }
  0xf8   :  { %v588_v19 = vpop.f32.mrb[1].mxu0  ;;  %v632_v20 = vpop.f32.mrb[1].mxu1 }
  0xf9   :  { %v589_v21 = vadd.f32 %v588_v19, %v587_v17  ;;  %v633_v22 = vadd.f32 %v632_v20, %v631_v18 }
  0xfb   :  { %v474_v23 = vmax.f32 %v589_v21, %v633_v22  ;;  %v590_v24 = vpop.f32.mrb[2].mxu0  ;;  %v634_v25 = vpop.f32.mrb[2].mxu1 }
  0xfc   :  { %v591_v26 = vpop.f32.mrb[3].mxu0  ;;  %v635_v27 = vpop.f32.mrb[3].mxu1 }
  0xfd   :  { %v592_v28 = vadd.f32 %v591_v26, %v590_v24  ;;  %v636_v29 = vadd.f32 %v635_v27, %v634_v25 }
  0xff   :  { %v475_v30 = vmax.f32 %v592_v28, %v636_v29  ;;  %v593_v31 = vpop.f32.mrb[4].mxu0  ;;  %v637_v32 = vpop.f32.mrb[4].mxu1 }
 0x100   :  { %v594_v33 = vpop.f32.mrb[5].mxu0  ;;  %v638_v34 = vpop.f32.mrb[5].mxu1 }
 0x101   :  { %v595_v35 = vadd.f32 %v594_v33, %v593_v31  ;;  %v639_v36 = vadd.f32 %v638_v34, %v637_v32 }
 0x103   :  { %v476_v37 = vmax.f32 %v595_v35, %v639_v36  ;;  %v596_v38 = vpop.f32.mrb[6].mxu0  ;;  %v640_v39 = vpop.f32.mrb[6].mxu1 }
 0x104   :  { %v597_v40 = vpop.f32.mrb[7].mxu0  ;;  %v641_v41 = vpop.f32.mrb[7].mxu1 }
 0x105   :  { %v598_v42 = vadd.f32 %v597_v40, %v596_v38  ;;  %v642_v43 = vadd.f32 %v641_v41, %v640_v39 }
 0x107   :  { %v477_v44 = vmax.f32 %v598_v42, %v642_v43 }
 0x117   :  { %v675_v45 = vpop.f32.mrb[8].mxu0  ;;  %v719_v46 = vpop.f32.mrb[8].mxu1 }
 0x118   :  { %v676_v47 = vpop.f32.mrb[9].mxu0  ;;  %v720_v48 = vpop.f32.mrb[9].mxu1 }
 0x119   :  { %v677_v49 = vadd.f32 %v676_v47, %v675_v45  ;;  %v721_v50 = vadd.f32 %v720_v48, %v719_v46 }
 0x11b   :  { %v478_v51 = vmax.f32 %v677_v49, %v721_v50  ;;  %v678_v52 = vpop.f32.mrb[10].mxu0  ;;  %v722_v53 = vpop.f32.mrb[10].mxu1 }
 0x11c   :  { %v679_v55 = vpop.f32.mrb[11].mxu0  ;;  %v723_v56 = vpop.f32.mrb[11].mxu1 }
 0x11d   :  { %v482_v57 = vmax.f32 %v474_v23, %v478_v51  ;;  %v680_v58 = vadd.f32 %v679_v55, %v678_v52  ;;  %v724_v59 = vadd.f32 %v723_v56, %v722_v53 }
 0x11f   :  { %v493_v60 = vadd.f32 %v554_v54, %v482_v57  ;;  %v479_v61 = vmax.f32 %v680_v58, %v724_v59  ;;  %v681_v62 = vpop.f32.mrb[12].mxu0  ;;  %v725_v63 = vpop.f32.mrb[12].mxu1 }
 0x120   :  { %v682_v0 = vpop.f32.mrb[13].mxu0  ;;  %v726_v1 = vpop.f32.mrb[13].mxu1 }
 0x121   :  { %v497_v2 = vmax.f32 %v493_v60, 0.0  ;;  %v483_v3 = vmax.f32 %v475_v30, %v479_v61  ;;  %v683_v4 = vadd.f32 %v682_v0, %v681_v62  ;;  %v727_v5 = vadd.f32 %v726_v1, %v725_v63 }
 0x123   :  { %502 = vst.msk [vmem:[%s1223_s3] sm:$0xff] %vm501_vm4, %v497_v2  ;;  %v494_v6 = vadd.f32 %v554_v54, %v483_v3  ;;  %v480_v7 = vmax.f32 %v683_v4, %v727_v5  ;;  %v684_v8 = vpop.f32.mrb[14].mxu0  ;;  %v728_v9 = vpop.f32.mrb[14].mxu1 }
 0x124   :  { %v685_v10 = vpop.f32.mrb[15].mxu0  ;;  %v729_v11 = vpop.f32.mrb[15].mxu1 }
 0x125   :  { %v498_v12 = vmax.f32 %v494_v6, 0.0  ;;  %v484_v13 = vmax.f32 %v476_v37, %v480_v7  ;;  %v686_v14 = vadd.f32 %v685_v10, %v684_v8  ;;  %v730_v15 = vadd.f32 %v729_v11, %v728_v9 }
 0x127   :  { %503 = vst.msk [vmem:[%s1223_s3 + $0x8] sm:$0xff] %vm501_vm4, %v498_v12  ;;  %v495_v16 = vadd.f32 %v554_v54, %v484_v13  ;;  %v481_v17 = vmax.f32 %v686_v14, %v730_v15 }
 0x129   :  { %v499_v18 = vmax.f32 %v495_v16, 0.0  ;;  %v485_v19 = vmax.f32 %v477_v44, %v481_v17 }
 0x12b   :  { %504 = vst.msk [vmem:[%s1223_s3 + $0x10] sm:$0xff] %vm501_vm4, %v499_v18  ;;  %v496_v20 = vadd.f32 %v554_v54, %v485_v19 }
 0x12d   :  { %v500_v21 = vmax.f32 %v496_v20, 0.0 }
 0x12f   :  { %505 = vst.msk [vmem:[%s1223_s3 + $0x18] sm:$0xff] %vm501_vm4, %v500_v21 }

</bundles_post_ra>
